<compile_context>
chip_gen: v7x
topology: tpu7x:2x2x1
jax: 0.10.0
libtpu: 0.0.40
codegen_flags: <defaults>
</compile_context>

<pallas_src>
import functools

import jax
import jax.numpy as jnp
from jax.experimental import pallas as pl
from jax.experimental.pallas import tpu as pltpu


def _lstm_fc_kernel(x_ref,       # (T*B, D)   time-major flattened input (f32)
                    wih0_ref,    # (D, 4H)    layer-0 input weights   (compute dtype)
                    whh0_ref,    # (H, 4H)    layer-0 recurrent weights (compute dtype)
                    b0_ref,      # (1, 4H)    layer-0 combined bias (f32)
                    w1_ref,      # (2H, 4H)   fused layer-1 [W_ih1; W_hh1] (compute dtype)
                    b1_ref,      # (1, 4H)    layer-1 combined bias (f32)
                    wfc_ref,     # (H, O_pad) lane-padded FC weight (compute dtype)
                    bfc_ref,     # (1, O_pad) lane-padded FC bias (f32)
                    out_ref,     # (B, O_pad) f32
                    hcat_ref,    # (B, 2H)    VMEM scratch: fused layer-1 input [h1|h2]
                    xproj_ref):  # (T*B, 4H)  VMEM scratch: hoisted layer-0 projection
    B = out_ref.shape[0]
    TB = x_ref.shape[0]
    T = TB // B
    H = whh0_ref.shape[0]
    dt = whh0_ref.dtype              # MXU operand dtype (bf16 on v6e/v7x, f32 on v5e)

    # Hoist weight loads / broadcasts out of the recurrence.
    whh0 = whh0_ref[...]
    w1 = w1_ref[...]
    b1 = jnp.broadcast_to(b1_ref[...], (B, 4 * H))   # single broadcast, reused per step

    # Hoisted layer-0 input projection for ALL timesteps: one streamed MXU matmul,
    # bias folded in, parked in VMEM scratch and sliced per step (low vreg pressure).
    xproj_ref[...] = (jnp.dot(x_ref[...].astype(dt), wih0_ref[...],
                              preferred_element_type=jnp.float32)
                      + b0_ref[...])                  # (T*B, 4H) f32

    def gates_to_hc(gates, c):
        # Gate order is PyTorch's [i, f, g, o]. Push the FULL (B, 4H) vreg through
        # both nonlinearities (same EUP cost as partial), slice afterwards: no
        # pre-EUP masked select/relayout on the serial critical path.
        sig = jax.nn.sigmoid(gates)
        tnh = jnp.tanh(gates)
        i = sig[:, 0 * H:1 * H]
        f = sig[:, 1 * H:2 * H]
        g = tnh[:, 2 * H:3 * H]
        o = sig[:, 3 * H:4 * H]
        c_new = f * c + i * g
        h_new = o * jnp.tanh(c_new)
        return h_new, c_new

    zeros = jnp.zeros((B, H), jnp.float32)
    h1, c1, c2 = zeros, zeros, zeros
    h2 = zeros
    # hcat scratch holds [h1 | h2] in the matmul operand dtype; replaces the
    # per-step jnp.concatenate (no lane-domain relayout in the recurrence).
    hcat_ref[...] = jnp.zeros_like(hcat_ref)

    # T is small & static: fully unroll (concrete slice indices, max LLO visibility).
    for t in range(T):
        # Layer 0: input projection precomputed; only the recurrent matmul remains.
        g0 = xproj_ref[t * B:(t + 1) * B, :] + jnp.dot(
            h1.astype(dt), whh0, preferred_element_type=jnp.float32)
        h1, c1 = gates_to_hc(g0, c1)
        hcat_ref[:, :H] = h1.astype(dt)
        # Layer 1: fused [input | recurrent] matmul: (B, 2H) @ (2H, 4H).
        g1 = jnp.dot(hcat_ref[...], w1, preferred_element_type=jnp.float32) + b1
        h2, c2 = gates_to_hc(g1, c2)
        hcat_ref[:, H:] = h2.astype(dt)

    # Final Linear on the last timestep's top-layer hidden state (lane-dense output).
    out_ref[...] = (jnp.dot(h2.astype(dt), wfc_ref[...],
                            preferred_element_type=jnp.float32)
                    + bfc_ref[...])


def _default_compute_dtype():
    """bf16 matmul operands on native-bf16 MXU chips (v6e/v7x); f32 on v5e and older."""
    try:
        kind = jax.devices()[0].device_kind.lower()
    except Exception:
        return jnp.float32
    for tag in ("v2", "v3", "v4", "v5"):
        if tag in kind:
            return jnp.float32
    return jnp.bfloat16


def preprocess_params(params, compute_dtype=None):
    """One-time parameter preprocessing — call ONCE and reuse across forward calls.

    - fuses layer-1 weights into [W_ih1; W_hh1] -> (2H, 4H)
    - lane-pads the FC weight/bias to a 128-multiple output width
    - casts matmul-operand weights to the MXU compute dtype (bf16 on v6e/v7x)
    Biases (and all elementwise/state math in the kernel) stay f32.
    """
    if compute_dtype is None:
        compute_dtype = _default_compute_dtype()
    H = params["whh0"].shape[0]
    O = params["wfc"].shape[1]
    O_pad = max(128, ((O + 127) // 128) * 128)

    w1 = jnp.concatenate([params["wih1"], params["whh1"]], axis=0)       # (2H, 4H)
    wfc_p = jnp.zeros((H, O_pad), jnp.float32).at[:, :O].set(params["wfc"])
    bfc_p = jnp.zeros((1, O_pad), jnp.float32).at[:, :O].set(params["bfc"])

    return {
        "wih0": params["wih0"].astype(compute_dtype),
        "whh0": params["whh0"].astype(compute_dtype),
        "b0": params["b0"].astype(jnp.float32),
        "w1": w1.astype(compute_dtype),
        "b1": params["b1"].astype(jnp.float32),
        "wfc": wfc_p.astype(compute_dtype),
        "bfc": bfc_p,
    }


@functools.partial(jax.jit, static_argnames=("out_dim",))
def lstm_price_predictor(x, prepped, *, out_dim):
    """x: (B, T, D) float32, batch_first (PyTorch convention). Returns (B, out_dim)."""
    B, T, D = x.shape
    H = prepped["whh0"].shape[0]
    O_pad = prepped["wfc"].shape[1]
    dt = prepped["whh0"].dtype

    # Time-major, flattened to (T*B, D) so the layer-0 projection is one matmul.
    x_tm = jnp.transpose(x, (1, 0, 2)).reshape(T * B, D)

    vmem = pl.BlockSpec(memory_space=pltpu.MemorySpace.VMEM)
    out_padded = pl.pallas_call(
        _lstm_fc_kernel,
        out_shape=jax.ShapeDtypeStruct((B, O_pad), jnp.float32),
        in_specs=[vmem] * 8,
        out_specs=vmem,
        scratch_shapes=[
            pltpu.VMEM((B, 2 * H), dt),            # fused layer-1 input [h1|h2]
            pltpu.VMEM((T * B, 4 * H), jnp.float32),  # hoisted layer-0 projection
        ],
    )(x_tm, prepped["wih0"], prepped["whh0"], prepped["b0"],
      prepped["w1"], prepped["b1"], prepped["wfc"], prepped["bfc"])

    return out_padded[:, :out_dim]


def _reference(x, params):
    """Pure-JAX f32 reference implementing PyTorch nn.LSTM(+Linear) semantics."""
    B, T, D = x.shape
    H = params["whh0"].shape[0]

    def cell(xt, h, c, wih, whh, b):
        gates = xt @ wih + h @ whh + b
        i = jax.nn.sigmoid(gates[:, 0 * H:1 * H])
        f = jax.nn.sigmoid(gates[:, 1 * H:2 * H])
        g = jnp.tanh(gates[:, 2 * H:3 * H])
        o = jax.nn.sigmoid(gates[:, 3 * H:4 * H])
        c = f * c + i * g
        h = o * jnp.tanh(c)
        return h, c

    h1 = c1 = h2 = c2 = jnp.zeros((B, H), jnp.float32)
    for t in range(T):
        h1, c1 = cell(x[:, t, :], h1, c1, params["wih0"], params["whh0"], params["b0"])
        h2, c2 = cell(h1, h2, c2, params["wih1"], params["whh1"], params["b1"])
    return h2 @ params["wfc"] + params["bfc"]


def init_params(key, input_dim, hidden_dim, output_dim):
    """Deterministic synthetic parameters (shapes match nn.LSTM / nn.Linear)."""
    ks = jax.random.split(key, 10)
    s = 1.0 / jnp.sqrt(hidden_dim)
    u = lambda k, shape: jax.random.uniform(k, shape, jnp.float32, -s, s)
    H4 = 4 * hidden_dim
    return {
        # PyTorch stores weight_ih_l0 as (4H, D); we pass the transpose (D, 4H).
        "wih0": u(ks[0], (input_dim, H4)),
        "whh0": u(ks[1], (hidden_dim, H4)),
        # b_ih + b_hh combined into a single (1, 4H) bias.
        "b0": u(ks[2], (1, H4)) + u(ks[3], (1, H4)),
        "wih1": u(ks[4], (hidden_dim, H4)),
        "whh1": u(ks[5], (hidden_dim, H4)),
        "b1": u(ks[6], (1, H4)) + u(ks[7], (1, H4)),
        "wfc": u(ks[8], (hidden_dim, output_dim)),
        "bfc": u(ks[9], (1, output_dim)),
    }


if __name__ == "__main__":
    B, T, D, H, O = 8, 8, 16, 32, 1

    key = jax.random.PRNGKey(0)
    kx, kp = jax.random.split(key)
    x = jax.random.normal(kx, (B, T, D), jnp.float32)
    params = init_params(kp, D, H, O)

    # One-time parameter preprocessing (cached; NOT repeated per forward call).
    prepped = preprocess_params(params)
    prepped = jax.tree_util.tree_map(jax.block_until_ready, prepped)

    y = lstm_price_predictor(x, prepped, out_dim=O)
    y = jax.block_until_ready(y)

    y_ref = _reference(x, params)
    assert y.shape == (B, O)
    # bf16 matmul operands (v6e/v7x) need a looser tolerance than pure f32 (v5e).
    tol = 2e-2 if prepped["whh0"].dtype == jnp.bfloat16 else 1e-4
    assert jnp.allclose(y, y_ref, atol=tol, rtol=tol), (y, y_ref)

    print("KERNEL_OK")
</pallas_src>

<mosaic_0001>
module attributes {stable_mosaic.version = 11 : i64} {
  func.func @_lstm_fc_kernel(%arg0: memref<64x16xf32, #tpu.memory_space<vmem>>, %arg1: memref<16x128xbf16, #tpu.memory_space<vmem>>, %arg2: memref<32x128xbf16, #tpu.memory_space<vmem>>, %arg3: memref<1x128xf32, #tpu.memory_space<vmem>>, %arg4: memref<64x128xbf16, #tpu.memory_space<vmem>>, %arg5: memref<1x128xf32, #tpu.memory_space<vmem>>, %arg6: memref<32x128xbf16, #tpu.memory_space<vmem>>, %arg7: memref<1x128xf32, #tpu.memory_space<vmem>>, %arg8: memref<8x128xf32, #tpu.memory_space<vmem>>, %arg9: memref<8x64xbf16, #tpu.memory_space<vmem>>, %arg10: memref<64x128xf32, #tpu.memory_space<vmem>>) attributes {dimension_semantics = [], scalar_prefetch = 0 : i64, scratch_operands = 2 : i64, tpu.core_type = #tpu.core_type<tc>} {
    %c0 = arith.constant 0 : index
    %c0_0 = arith.constant 0 : index
    %0 = vector.load %arg2[%c0, %c0_0] : memref<32x128xbf16, #tpu.memory_space<vmem>>, vector<32x128xbf16>
    %c0_1 = arith.constant 0 : index
    %c0_2 = arith.constant 0 : index
    %1 = vector.load %arg4[%c0_1, %c0_2] : memref<64x128xbf16, #tpu.memory_space<vmem>>, vector<64x128xbf16>
    %c0_3 = arith.constant 0 : index
    %c0_4 = arith.constant 0 : index
    %2 = vector.load %arg5[%c0_3, %c0_4] : memref<1x128xf32, #tpu.memory_space<vmem>>, vector<1x128xf32>
    %3 = vector.shape_cast %2 : vector<1x128xf32> to vector<1x128xf32>
    %4 = vector.broadcast %3 : vector<1x128xf32> to vector<8x128xf32>
    %c0_5 = arith.constant 0 : index
    %c0_6 = arith.constant 0 : index
    %5 = vector.load %arg0[%c0_5, %c0_6] : memref<64x16xf32, #tpu.memory_space<vmem>>, vector<64x16xf32>
    %6 = arith.truncf %5 : vector<64x16xf32> to vector<64x16xbf16>
    %c0_7 = arith.constant 0 : index
    %c0_8 = arith.constant 0 : index
    %7 = vector.load %arg1[%c0_7, %c0_8] : memref<16x128xbf16, #tpu.memory_space<vmem>>, vector<16x128xbf16>
    %cst = arith.constant dense<0.000000e+00> : vector<64x128xf32>
    %8 = tpu.matmul %6, %7, %cst {dimension_numbers = #tpu.dot_dimension_numbers<[1], [0], [0], [1], [0, 0, 1, 1], [], []>} : vector<64x16xbf16>, vector<16x128xbf16>, vector<64x128xf32> -> vector<64x128xf32>
    %c0_9 = arith.constant 0 : index
    %c0_10 = arith.constant 0 : index
    %9 = vector.load %arg3[%c0_9, %c0_10] : memref<1x128xf32, #tpu.memory_space<vmem>>, vector<1x128xf32>
    %10 = vector.broadcast %9 : vector<1x128xf32> to vector<64x128xf32>
    %11 = arith.addf %8, %10 : vector<64x128xf32>
    %c0_11 = arith.constant 0 : index
    %c0_12 = arith.constant 0 : index
    %12 = vector.load %arg10[%c0_11, %c0_12] : memref<64x128xf32, #tpu.memory_space<vmem>>, vector<64x128xf32>
    tpu.vector_store %arg10[%c0_11, %c0_12], %11 {strides = array<i32>} : memref<64x128xf32, #tpu.memory_space<vmem>>, vector<64x128xf32>,
    %cst_13 = arith.constant 0.000000e+00 : f32
    %13 = vector.broadcast %cst_13 : f32 to vector<8x32xf32>
    %cst_14 = arith.constant 0.000000e+00 : bf16
    %14 = vector.broadcast %cst_14 : bf16 to vector<8x64xbf16>
    %c0_15 = arith.constant 0 : index
    %c0_16 = arith.constant 0 : index
    %15 = vector.load %arg9[%c0_15, %c0_16] : memref<8x64xbf16, #tpu.memory_space<vmem>>, vector<8x64xbf16>
    tpu.vector_store %arg9[%c0_15, %c0_16], %14 {strides = array<i32>} : memref<8x64xbf16, #tpu.memory_space<vmem>>, vector<8x64xbf16>,
    %c0_17 = arith.constant 0 : index
    %c0_18 = arith.constant 0 : index
    %16 = vector.load %arg10[%c0_17, %c0_18] : memref<64x128xf32, #tpu.memory_space<vmem>>, vector<8x128xf32>
    %17 = arith.truncf %13 : vector<8x32xf32> to vector<8x32xbf16>
    %cst_19 = arith.constant dense<0.000000e+00> : vector<8x128xf32>
    %18 = tpu.matmul %17, %0, %cst_19 {dimension_numbers = #tpu.dot_dimension_numbers<[1], [0], [0], [1], [0, 0, 1, 1], [], []>} : vector<8x32xbf16>, vector<32x128xbf16>, vector<8x128xf32> -> vector<8x128xf32>
    %19 = arith.addf %16, %18 : vector<8x128xf32>
    %20 = arith.negf %19 : vector<8x128xf32>
    %21 = math.exp %20 : vector<8x128xf32>
    %cst_20 = arith.constant 1.000000e+00 : f32
    %22 = vector.broadcast %cst_20 : f32 to vector<8x128xf32>
    %23 = arith.addf %22, %21 : vector<8x128xf32>
    %24 = arith.divf %22, %23 : vector<8x128xf32>
    %25 = math.tanh %19 : vector<8x128xf32>
    %26 = vector.extract_strided_slice %24 {offsets = [0, 0], sizes = [8, 32], strides = [1, 1]} : vector<8x128xf32> to vector<8x32xf32>
    %27 = vector.extract_strided_slice %24 {offsets = [0, 32], sizes = [8, 32], strides = [1, 1]} : vector<8x128xf32> to vector<8x32xf32>
    %28 = vector.extract_strided_slice %25 {offsets = [0, 64], sizes = [8, 32], strides = [1, 1]} : vector<8x128xf32> to vector<8x32xf32>
    %29 = vector.extract_strided_slice %24 {offsets = [0, 96], sizes = [8, 32], strides = [1, 1]} : vector<8x128xf32> to vector<8x32xf32>
    %30 = arith.mulf %27, %13 : vector<8x32xf32>
    %31 = arith.mulf %26, %28 : vector<8x32xf32>
    %32 = arith.addf %30, %31 : vector<8x32xf32>
    %33 = math.tanh %32 : vector<8x32xf32>
    %34 = arith.mulf %29, %33 : vector<8x32xf32>
    %35 = arith.truncf %34 : vector<8x32xf32> to vector<8x32xbf16>
    %c0_21 = arith.constant 0 : index
    %c0_22 = arith.constant 0 : index
    %36 = vector.load %arg9[%c0_21, %c0_22] : memref<8x64xbf16, #tpu.memory_space<vmem>>, vector<8x32xbf16>
    tpu.vector_store %arg9[%c0_21, %c0_22], %35 {strides = array<i32>} : memref<8x64xbf16, #tpu.memory_space<vmem>>, vector<8x32xbf16>,
    %c0_23 = arith.constant 0 : index
    %c0_24 = arith.constant 0 : index
    %37 = vector.load %arg9[%c0_23, %c0_24] : memref<8x64xbf16, #tpu.memory_space<vmem>>, vector<8x64xbf16>
    %cst_25 = arith.constant dense<0.000000e+00> : vector<8x128xf32>
    %38 = tpu.matmul %37, %1, %cst_25 {dimension_numbers = #tpu.dot_dimension_numbers<[1], [0], [0], [1], [0, 0, 1, 1], [], []>} : vector<8x64xbf16>, vector<64x128xbf16>, vector<8x128xf32> -> vector<8x128xf32>
    %39 = arith.addf %38, %4 : vector<8x128xf32>
    %40 = arith.negf %39 : vector<8x128xf32>
    %41 = math.exp %40 : vector<8x128xf32>
    %cst_26 = arith.constant 1.000000e+00 : f32
    %42 = vector.broadcast %cst_26 : f32 to vector<8x128xf32>
    %43 = arith.addf %42, %41 : vector<8x128xf32>
    %44 = arith.divf %42, %43 : vector<8x128xf32>
    %45 = math.tanh %39 : vector<8x128xf32>
    %46 = vector.extract_strided_slice %44 {offsets = [0, 0], sizes = [8, 32], strides = [1, 1]} : vector<8x128xf32> to vector<8x32xf32>
    %47 = vector.extract_strided_slice %44 {offsets = [0, 32], sizes = [8, 32], strides = [1, 1]} : vector<8x128xf32> to vector<8x32xf32>
    %48 = vector.extract_strided_slice %45 {offsets = [0, 64], sizes = [8, 32], strides = [1, 1]} : vector<8x128xf32> to vector<8x32xf32>
    %49 = vector.extract_strided_slice %44 {offsets = [0, 96], sizes = [8, 32], strides = [1, 1]} : vector<8x128xf32> to vector<8x32xf32>
    %50 = arith.mulf %47, %13 : vector<8x32xf32>
    %51 = arith.mulf %46, %48 : vector<8x32xf32>
    %52 = arith.addf %50, %51 : vector<8x32xf32>
    %53 = math.tanh %52 : vector<8x32xf32>
    %54 = arith.mulf %49, %53 : vector<8x32xf32>
    %55 = arith.truncf %54 : vector<8x32xf32> to vector<8x32xbf16>
    %c0_27 = arith.constant 0 : index
    %c32 = arith.constant 32 : index
    %56 = vector.load %arg9[%c0_27, %c32] : memref<8x64xbf16, #tpu.memory_space<vmem>>, vector<8x32xbf16>
    tpu.vector_store %arg9[%c0_27, %c32], %55 {strides = array<i32>} : memref<8x64xbf16, #tpu.memory_space<vmem>>, vector<8x32xbf16>,
    %c8 = arith.constant 8 : index
    %c0_28 = arith.constant 0 : index
    %57 = vector.load %arg10[%c8, %c0_28] : memref<64x128xf32, #tpu.memory_space<vmem>>, vector<8x128xf32>
    %58 = arith.truncf %34 : vector<8x32xf32> to vector<8x32xbf16>
    %cst_29 = arith.constant dense<0.000000e+00> : vector<8x128xf32>
    %59 = tpu.matmul %58, %0, %cst_29 {dimension_numbers = #tpu.dot_dimension_numbers<[1], [0], [0], [1], [0, 0, 1, 1], [], []>} : vector<8x32xbf16>, vector<32x128xbf16>, vector<8x128xf32> -> vector<8x128xf32>
    %60 = arith.addf %57, %59 : vector<8x128xf32>
    %61 = arith.negf %60 : vector<8x128xf32>
    %62 = math.exp %61 : vector<8x128xf32>
    %cst_30 = arith.constant 1.000000e+00 : f32
    %63 = vector.broadcast %cst_30 : f32 to vector<8x128xf32>
    %64 = arith.addf %63, %62 : vector<8x128xf32>
    %65 = arith.divf %63, %64 : vector<8x128xf32>
    %66 = math.tanh %60 : vector<8x128xf32>
    %67 = vector.extract_strided_slice %65 {offsets = [0, 0], sizes = [8, 32], strides = [1, 1]} : vector<8x128xf32> to vector<8x32xf32>
    %68 = vector.extract_strided_slice %65 {offsets = [0, 32], sizes = [8, 32], strides = [1, 1]} : vector<8x128xf32> to vector<8x32xf32>
    %69 = vector.extract_strided_slice %66 {offsets = [0, 64], sizes = [8, 32], strides = [1, 1]} : vector<8x128xf32> to vector<8x32xf32>
    %70 = vector.extract_strided_slice %65 {offsets = [0, 96], sizes = [8, 32], strides = [1, 1]} : vector<8x128xf32> to vector<8x32xf32>
    %71 = arith.mulf %68, %32 : vector<8x32xf32>
    %72 = arith.mulf %67, %69 : vector<8x32xf32>
    %73 = arith.addf %71, %72 : vector<8x32xf32>
    %74 = math.tanh %73 : vector<8x32xf32>
    %75 = arith.mulf %70, %74 : vector<8x32xf32>
    %76 = arith.truncf %75 : vector<8x32xf32> to vector<8x32xbf16>
    %c0_31 = arith.constant 0 : index
    %c0_32 = arith.constant 0 : index
    %77 = vector.load %arg9[%c0_31, %c0_32] : memref<8x64xbf16, #tpu.memory_space<vmem>>, vector<8x32xbf16>
    tpu.vector_store %arg9[%c0_31, %c0_32], %76 {strides = array<i32>} : memref<8x64xbf16, #tpu.memory_space<vmem>>, vector<8x32xbf16>,
    %c0_33 = arith.constant 0 : index
    %c0_34 = arith.constant 0 : index
    %78 = vector.load %arg9[%c0_33, %c0_34] : memref<8x64xbf16, #tpu.memory_space<vmem>>, vector<8x64xbf16>
    %cst_35 = arith.constant dense<0.000000e+00> : vector<8x128xf32>
    %79 = tpu.matmul %78, %1, %cst_35 {dimension_numbers = #tpu.dot_dimension_numbers<[1], [0], [0], [1], [0, 0, 1, 1], [], []>} : vector<8x64xbf16>, vector<64x128xbf16>, vector<8x128xf32> -> vector<8x128xf32>
    %80 = arith.addf %79, %4 : vector<8x128xf32>
    %81 = arith.negf %80 : vector<8x128xf32>
    %82 = math.exp %81 : vector<8x128xf32>
    %cst_36 = arith.constant 1.000000e+00 : f32
    %83 = vector.broadcast %cst_36 : f32 to vector<8x128xf32>
    %84 = arith.addf %83, %82 : vector<8x128xf32>
    %85 = arith.divf %83, %84 : vector<8x128xf32>
    %86 = math.tanh %80 : vector<8x128xf32>
    %87 = vector.extract_strided_slice %85 {offsets = [0, 0], sizes = [8, 32], strides = [1, 1]} : vector<8x128xf32> to vector<8x32xf32>
    %88 = vector.extract_strided_slice %85 {offsets = [0, 32], sizes = [8, 32], strides = [1, 1]} : vector<8x128xf32> to vector<8x32xf32>
    %89 = vector.extract_strided_slice %86 {offsets = [0, 64], sizes = [8, 32], strides = [1, 1]} : vector<8x128xf32> to vector<8x32xf32>
    %90 = vector.extract_strided_slice %85 {offsets = [0, 96], sizes = [8, 32], strides = [1, 1]} : vector<8x128xf32> to vector<8x32xf32>
    %91 = arith.mulf %88, %52 : vector<8x32xf32>
    %92 = arith.mulf %87, %89 : vector<8x32xf32>
    %93 = arith.addf %91, %92 : vector<8x32xf32>
    %94 = math.tanh %93 : vector<8x32xf32>
    %95 = arith.mulf %90, %94 : vector<8x32xf32>
    %96 = arith.truncf %95 : vector<8x32xf32> to vector<8x32xbf16>
    %c0_37 = arith.constant 0 : index
    %c32_38 = arith.constant 32 : index
    %97 = vector.load %arg9[%c0_37, %c32_38] : memref<8x64xbf16, #tpu.memory_space<vmem>>, vector<8x32xbf16>
    tpu.vector_store %arg9[%c0_37, %c32_38], %96 {strides = array<i32>} : memref<8x64xbf16, #tpu.memory_space<vmem>>, vector<8x32xbf16>,
    %c16 = arith.constant 16 : index
    %c0_39 = arith.constant 0 : index
    %98 = vector.load %arg10[%c16, %c0_39] : memref<64x128xf32, #tpu.memory_space<vmem>>, vector<8x128xf32>
    %99 = arith.truncf %75 : vector<8x32xf32> to vector<8x32xbf16>
    %cst_40 = arith.constant dense<0.000000e+00> : vector<8x128xf32>
    %100 = tpu.matmul %99, %0, %cst_40 {dimension_numbers = #tpu.dot_dimension_numbers<[1], [0], [0], [1], [0, 0, 1, 1], [], []>} : vector<8x32xbf16>, vector<32x128xbf16>, vector<8x128xf32> -> vector<8x128xf32>
    %101 = arith.addf %98, %100 : vector<8x128xf32>
    %102 = arith.negf %101 : vector<8x128xf32>
    %103 = math.exp %102 : vector<8x128xf32>
    %cst_41 = arith.constant 1.000000e+00 : f32
    %104 = vector.broadcast %cst_41 : f32 to vector<8x128xf32>
    %105 = arith.addf %104, %103 : vector<8x128xf32>
    %106 = arith.divf %104, %105 : vector<8x128xf32>
    %107 = math.tanh %101 : vector<8x128xf32>
    %108 = vector.extract_strided_slice %106 {offsets = [0, 0], sizes = [8, 32], strides = [1, 1]} : vector<8x128xf32> to vector<8x32xf32>
    %109 = vector.extract_strided_slice %106 {offsets = [0, 32], sizes = [8, 32], strides = [1, 1]} : vector<8x128xf32> to vector<8x32xf32>
    %110 = vector.extract_strided_slice %107 {offsets = [0, 64], sizes = [8, 32], strides = [1, 1]} : vector<8x128xf32> to vector<8x32xf32>
    %111 = vector.extract_strided_slice %106 {offsets = [0, 96], sizes = [8, 32], strides = [1, 1]} : vector<8x128xf32> to vector<8x32xf32>
    %112 = arith.mulf %109, %73 : vector<8x32xf32>
    %113 = arith.mulf %108, %110 : vector<8x32xf32>
    %114 = arith.addf %112, %113 : vector<8x32xf32>
    %115 = math.tanh %114 : vector<8x32xf32>
    %116 = arith.mulf %111, %115 : vector<8x32xf32>
    %117 = arith.truncf %116 : vector<8x32xf32> to vector<8x32xbf16>
    %c0_42 = arith.constant 0 : index
    %c0_43 = arith.constant 0 : index
    %118 = vector.load %arg9[%c0_42, %c0_43] : memref<8x64xbf16, #tpu.memory_space<vmem>>, vector<8x32xbf16>
    tpu.vector_store %arg9[%c0_42, %c0_43], %117 {strides = array<i32>} : memref<8x64xbf16, #tpu.memory_space<vmem>>, vector<8x32xbf16>,
    %c0_44 = arith.constant 0 : index
    %c0_45 = arith.constant 0 : index
    %119 = vector.load %arg9[%c0_44, %c0_45] : memref<8x64xbf16, #tpu.memory_space<vmem>>, vector<8x64xbf16>
    %cst_46 = arith.constant dense<0.000000e+00> : vector<8x128xf32>
    %120 = tpu.matmul %119, %1, %cst_46 {dimension_numbers = #tpu.dot_dimension_numbers<[1], [0], [0], [1], [0, 0, 1, 1], [], []>} : vector<8x64xbf16>, vector<64x128xbf16>, vector<8x128xf32> -> vector<8x128xf32>
    %121 = arith.addf %120, %4 : vector<8x128xf32>
    %122 = arith.negf %121 : vector<8x128xf32>
    %123 = math.exp %122 : vector<8x128xf32>
    %cst_47 = arith.constant 1.000000e+00 : f32
    %124 = vector.broadcast %cst_47 : f32 to vector<8x128xf32>
    %125 = arith.addf %124, %123 : vector<8x128xf32>
    %126 = arith.divf %124, %125 : vector<8x128xf32>
    %127 = math.tanh %121 : vector<8x128xf32>
    %128 = vector.extract_strided_slice %126 {offsets = [0, 0], sizes = [8, 32], strides = [1, 1]} : vector<8x128xf32> to vector<8x32xf32>
    %129 = vector.extract_strided_slice %126 {offsets = [0, 32], sizes = [8, 32], strides = [1, 1]} : vector<8x128xf32> to vector<8x32xf32>
    %130 = vector.extract_strided_slice %127 {offsets = [0, 64], sizes = [8, 32], strides = [1, 1]} : vector<8x128xf32> to vector<8x32xf32>
    %131 = vector.extract_strided_slice %126 {offsets = [0, 96], sizes = [8, 32], strides = [1, 1]} : vector<8x128xf32> to vector<8x32xf32>
    %132 = arith.mulf %129, %93 : vector<8x32xf32>
    %133 = arith.mulf %128, %130 : vector<8x32xf32>
    %134 = arith.addf %132, %133 : vector<8x32xf32>
    %135 = math.tanh %134 : vector<8x32xf32>
    %136 = arith.mulf %131, %135 : vector<8x32xf32>
    %137 = arith.truncf %136 : vector<8x32xf32> to vector<8x32xbf16>
    %c0_48 = arith.constant 0 : index
    %c32_49 = arith.constant 32 : index
    %138 = vector.load %arg9[%c0_48, %c32_49] : memref<8x64xbf16, #tpu.memory_space<vmem>>, vector<8x32xbf16>
    tpu.vector_store %arg9[%c0_48, %c32_49], %137 {strides = array<i32>} : memref<8x64xbf16, #tpu.memory_space<vmem>>, vector<8x32xbf16>,
    %c24 = arith.constant 24 : index
    %c0_50 = arith.constant 0 : index
    %139 = vector.load %arg10[%c24, %c0_50] : memref<64x128xf32, #tpu.memory_space<vmem>>, vector<8x128xf32>
    %140 = arith.truncf %116 : vector<8x32xf32> to vector<8x32xbf16>
    %cst_51 = arith.constant dense<0.000000e+00> : vector<8x128xf32>
    %141 = tpu.matmul %140, %0, %cst_51 {dimension_numbers = #tpu.dot_dimension_numbers<[1], [0], [0], [1], [0, 0, 1, 1], [], []>} : vector<8x32xbf16>, vector<32x128xbf16>, vector<8x128xf32> -> vector<8x128xf32>
    %142 = arith.addf %139, %141 : vector<8x128xf32>
    %143 = arith.negf %142 : vector<8x128xf32>
    %144 = math.exp %143 : vector<8x128xf32>
    %cst_52 = arith.constant 1.000000e+00 : f32
    %145 = vector.broadcast %cst_52 : f32 to vector<8x128xf32>
    %146 = arith.addf %145, %144 : vector<8x128xf32>
    %147 = arith.divf %145, %146 : vector<8x128xf32>
    %148 = math.tanh %142 : vector<8x128xf32>
    %149 = vector.extract_strided_slice %147 {offsets = [0, 0], sizes = [8, 32], strides = [1, 1]} : vector<8x128xf32> to vector<8x32xf32>
    %150 = vector.extract_strided_slice %147 {offsets = [0, 32], sizes = [8, 32], strides = [1, 1]} : vector<8x128xf32> to vector<8x32xf32>
    %151 = vector.extract_strided_slice %148 {offsets = [0, 64], sizes = [8, 32], strides = [1, 1]} : vector<8x128xf32> to vector<8x32xf32>
    %152 = vector.extract_strided_slice %147 {offsets = [0, 96], sizes = [8, 32], strides = [1, 1]} : vector<8x128xf32> to vector<8x32xf32>
    %153 = arith.mulf %150, %114 : vector<8x32xf32>
    %154 = arith.mulf %149, %151 : vector<8x32xf32>
    %155 = arith.addf %153, %154 : vector<8x32xf32>
    %156 = math.tanh %155 : vector<8x32xf32>
    %157 = arith.mulf %152, %156 : vector<8x32xf32>
    %158 = arith.truncf %157 : vector<8x32xf32> to vector<8x32xbf16>
    %c0_53 = arith.constant 0 : index
    %c0_54 = arith.constant 0 : index
    %159 = vector.load %arg9[%c0_53, %c0_54] : memref<8x64xbf16, #tpu.memory_space<vmem>>, vector<8x32xbf16>
    tpu.vector_store %arg9[%c0_53, %c0_54], %158 {strides = array<i32>} : memref<8x64xbf16, #tpu.memory_space<vmem>>, vector<8x32xbf16>,
    %c0_55 = arith.constant 0 : index
    %c0_56 = arith.constant 0 : index
    %160 = vector.load %arg9[%c0_55, %c0_56] : memref<8x64xbf16, #tpu.memory_space<vmem>>, vector<8x64xbf16>
    %cst_57 = arith.constant dense<0.000000e+00> : vector<8x128xf32>
    %161 = tpu.matmul %160, %1, %cst_57 {dimension_numbers = #tpu.dot_dimension_numbers<[1], [0], [0], [1], [0, 0, 1, 1], [], []>} : vector<8x64xbf16>, vector<64x128xbf16>, vector<8x128xf32> -> vector<8x128xf32>
    %162 = arith.addf %161, %4 : vector<8x128xf32>
    %163 = arith.negf %162 : vector<8x128xf32>
    %164 = math.exp %163 : vector<8x128xf32>
    %cst_58 = arith.constant 1.000000e+00 : f32
    %165 = vector.broadcast %cst_58 : f32 to vector<8x128xf32>
    %166 = arith.addf %165, %164 : vector<8x128xf32>
    %167 = arith.divf %165, %166 : vector<8x128xf32>
    %168 = math.tanh %162 : vector<8x128xf32>
    %169 = vector.extract_strided_slice %167 {offsets = [0, 0], sizes = [8, 32], strides = [1, 1]} : vector<8x128xf32> to vector<8x32xf32>
    %170 = vector.extract_strided_slice %167 {offsets = [0, 32], sizes = [8, 32], strides = [1, 1]} : vector<8x128xf32> to vector<8x32xf32>
    %171 = vector.extract_strided_slice %168 {offsets = [0, 64], sizes = [8, 32], strides = [1, 1]} : vector<8x128xf32> to vector<8x32xf32>
    %172 = vector.extract_strided_slice %167 {offsets = [0, 96], sizes = [8, 32], strides = [1, 1]} : vector<8x128xf32> to vector<8x32xf32>
    %173 = arith.mulf %170, %134 : vector<8x32xf32>
    %174 = arith.mulf %169, %171 : vector<8x32xf32>
    %175 = arith.addf %173, %174 : vector<8x32xf32>
    %176 = math.tanh %175 : vector<8x32xf32>
    %177 = arith.mulf %172, %176 : vector<8x32xf32>
    %178 = arith.truncf %177 : vector<8x32xf32> to vector<8x32xbf16>
    %c0_59 = arith.constant 0 : index
    %c32_60 = arith.constant 32 : index
    %179 = vector.load %arg9[%c0_59, %c32_60] : memref<8x64xbf16, #tpu.memory_space<vmem>>, vector<8x32xbf16>
    tpu.vector_store %arg9[%c0_59, %c32_60], %178 {strides = array<i32>} : memref<8x64xbf16, #tpu.memory_space<vmem>>, vector<8x32xbf16>,
    %c32_61 = arith.constant 32 : index
    %c0_62 = arith.constant 0 : index
    %180 = vector.load %arg10[%c32_61, %c0_62] : memref<64x128xf32, #tpu.memory_space<vmem>>, vector<8x128xf32>
    %181 = arith.truncf %157 : vector<8x32xf32> to vector<8x32xbf16>
    %cst_63 = arith.constant dense<0.000000e+00> : vector<8x128xf32>
    %182 = tpu.matmul %181, %0, %cst_63 {dimension_numbers = #tpu.dot_dimension_numbers<[1], [0], [0], [1], [0, 0, 1, 1], [], []>} : vector<8x32xbf16>, vector<32x128xbf16>, vector<8x128xf32> -> vector<8x128xf32>
    %183 = arith.addf %180, %182 : vector<8x128xf32>
    %184 = arith.negf %183 : vector<8x128xf32>
    %185 = math.exp %184 : vector<8x128xf32>
    %cst_64 = arith.constant 1.000000e+00 : f32
    %186 = vector.broadcast %cst_64 : f32 to vector<8x128xf32>
    %187 = arith.addf %186, %185 : vector<8x128xf32>
    %188 = arith.divf %186, %187 : vector<8x128xf32>
    %189 = math.tanh %183 : vector<8x128xf32>
    %190 = vector.extract_strided_slice %188 {offsets = [0, 0], sizes = [8, 32], strides = [1, 1]} : vector<8x128xf32> to vector<8x32xf32>
    %191 = vector.extract_strided_slice %188 {offsets = [0, 32], sizes = [8, 32], strides = [1, 1]} : vector<8x128xf32> to vector<8x32xf32>
    %192 = vector.extract_strided_slice %189 {offsets = [0, 64], sizes = [8, 32], strides = [1, 1]} : vector<8x128xf32> to vector<8x32xf32>
    %193 = vector.extract_strided_slice %188 {offsets = [0, 96], sizes = [8, 32], strides = [1, 1]} : vector<8x128xf32> to vector<8x32xf32>
    %194 = arith.mulf %191, %155 : vector<8x32xf32>
    %195 = arith.mulf %190, %192 : vector<8x32xf32>
    %196 = arith.addf %194, %195 : vector<8x32xf32>
    %197 = math.tanh %196 : vector<8x32xf32>
    %198 = arith.mulf %193, %197 : vector<8x32xf32>
    %199 = arith.truncf %198 : vector<8x32xf32> to vector<8x32xbf16>
    %c0_65 = arith.constant 0 : index
    %c0_66 = arith.constant 0 : index
    %200 = vector.load %arg9[%c0_65, %c0_66] : memref<8x64xbf16, #tpu.memory_space<vmem>>, vector<8x32xbf16>
    tpu.vector_store %arg9[%c0_65, %c0_66], %199 {strides = array<i32>} : memref<8x64xbf16, #tpu.memory_space<vmem>>, vector<8x32xbf16>,
    %c0_67 = arith.constant 0 : index
    %c0_68 = arith.constant 0 : index
    %201 = vector.load %arg9[%c0_67, %c0_68] : memref<8x64xbf16, #tpu.memory_space<vmem>>, vector<8x64xbf16>
    %cst_69 = arith.constant dense<0.000000e+00> : vector<8x128xf32>
    %202 = tpu.matmul %201, %1, %cst_69 {dimension_numbers = #tpu.dot_dimension_numbers<[1], [0], [0], [1], [0, 0, 1, 1], [], []>} : vector<8x64xbf16>, vector<64x128xbf16>, vector<8x128xf32> -> vector<8x128xf32>
    %203 = arith.addf %202, %4 : vector<8x128xf32>
    %204 = arith.negf %203 : vector<8x128xf32>
    %205 = math.exp %204 : vector<8x128xf32>
    %cst_70 = arith.constant 1.000000e+00 : f32
    %206 = vector.broadcast %cst_70 : f32 to vector<8x128xf32>
    %207 = arith.addf %206, %205 : vector<8x128xf32>
    %208 = arith.divf %206, %207 : vector<8x128xf32>
    %209 = math.tanh %203 : vector<8x128xf32>
    %210 = vector.extract_strided_slice %208 {offsets = [0, 0], sizes = [8, 32], strides = [1, 1]} : vector<8x128xf32> to vector<8x32xf32>
    %211 = vector.extract_strided_slice %208 {offsets = [0, 32], sizes = [8, 32], strides = [1, 1]} : vector<8x128xf32> to vector<8x32xf32>
    %212 = vector.extract_strided_slice %209 {offsets = [0, 64], sizes = [8, 32], strides = [1, 1]} : vector<8x128xf32> to vector<8x32xf32>
    %213 = vector.extract_strided_slice %208 {offsets = [0, 96], sizes = [8, 32], strides = [1, 1]} : vector<8x128xf32> to vector<8x32xf32>
    %214 = arith.mulf %211, %175 : vector<8x32xf32>
    %215 = arith.mulf %210, %212 : vector<8x32xf32>
    %216 = arith.addf %214, %215 : vector<8x32xf32>
    %217 = math.tanh %216 : vector<8x32xf32>
    %218 = arith.mulf %213, %217 : vector<8x32xf32>
    %219 = arith.truncf %218 : vector<8x32xf32> to vector<8x32xbf16>
    %c0_71 = arith.constant 0 : index
    %c32_72 = arith.constant 32 : index
    %220 = vector.load %arg9[%c0_71, %c32_72] : memref<8x64xbf16, #tpu.memory_space<vmem>>, vector<8x32xbf16>
    tpu.vector_store %arg9[%c0_71, %c32_72], %219 {strides = array<i32>} : memref<8x64xbf16, #tpu.memory_space<vmem>>, vector<8x32xbf16>,
    %c40 = arith.constant 40 : index
    %c0_73 = arith.constant 0 : index
    %221 = vector.load %arg10[%c40, %c0_73] : memref<64x128xf32, #tpu.memory_space<vmem>>, vector<8x128xf32>
    %222 = arith.truncf %198 : vector<8x32xf32> to vector<8x32xbf16>
    %cst_74 = arith.constant dense<0.000000e+00> : vector<8x128xf32>
    %223 = tpu.matmul %222, %0, %cst_74 {dimension_numbers = #tpu.dot_dimension_numbers<[1], [0], [0], [1], [0, 0, 1, 1], [], []>} : vector<8x32xbf16>, vector<32x128xbf16>, vector<8x128xf32> -> vector<8x128xf32>
    %224 = arith.addf %221, %223 : vector<8x128xf32>
    %225 = arith.negf %224 : vector<8x128xf32>
    %226 = math.exp %225 : vector<8x128xf32>
    %cst_75 = arith.constant 1.000000e+00 : f32
    %227 = vector.broadcast %cst_75 : f32 to vector<8x128xf32>
    %228 = arith.addf %227, %226 : vector<8x128xf32>
    %229 = arith.divf %227, %228 : vector<8x128xf32>
    %230 = math.tanh %224 : vector<8x128xf32>
    %231 = vector.extract_strided_slice %229 {offsets = [0, 0], sizes = [8, 32], strides = [1, 1]} : vector<8x128xf32> to vector<8x32xf32>
    %232 = vector.extract_strided_slice %229 {offsets = [0, 32], sizes = [8, 32], strides = [1, 1]} : vector<8x128xf32> to vector<8x32xf32>
    %233 = vector.extract_strided_slice %230 {offsets = [0, 64], sizes = [8, 32], strides = [1, 1]} : vector<8x128xf32> to vector<8x32xf32>
    %234 = vector.extract_strided_slice %229 {offsets = [0, 96], sizes = [8, 32], strides = [1, 1]} : vector<8x128xf32> to vector<8x32xf32>
    %235 = arith.mulf %232, %196 : vector<8x32xf32>
    %236 = arith.mulf %231, %233 : vector<8x32xf32>
    %237 = arith.addf %235, %236 : vector<8x32xf32>
    %238 = math.tanh %237 : vector<8x32xf32>
    %239 = arith.mulf %234, %238 : vector<8x32xf32>
    %240 = arith.truncf %239 : vector<8x32xf32> to vector<8x32xbf16>
    %c0_76 = arith.constant 0 : index
    %c0_77 = arith.constant 0 : index
    %241 = vector.load %arg9[%c0_76, %c0_77] : memref<8x64xbf16, #tpu.memory_space<vmem>>, vector<8x32xbf16>
    tpu.vector_store %arg9[%c0_76, %c0_77], %240 {strides = array<i32>} : memref<8x64xbf16, #tpu.memory_space<vmem>>, vector<8x32xbf16>,
    %c0_78 = arith.constant 0 : index
    %c0_79 = arith.constant 0 : index
    %242 = vector.load %arg9[%c0_78, %c0_79] : memref<8x64xbf16, #tpu.memory_space<vmem>>, vector<8x64xbf16>
    %cst_80 = arith.constant dense<0.000000e+00> : vector<8x128xf32>
    %243 = tpu.matmul %242, %1, %cst_80 {dimension_numbers = #tpu.dot_dimension_numbers<[1], [0], [0], [1], [0, 0, 1, 1], [], []>} : vector<8x64xbf16>, vector<64x128xbf16>, vector<8x128xf32> -> vector<8x128xf32>
    %244 = arith.addf %243, %4 : vector<8x128xf32>
    %245 = arith.negf %244 : vector<8x128xf32>
    %246 = math.exp %245 : vector<8x128xf32>
    %cst_81 = arith.constant 1.000000e+00 : f32
    %247 = vector.broadcast %cst_81 : f32 to vector<8x128xf32>
    %248 = arith.addf %247, %246 : vector<8x128xf32>
    %249 = arith.divf %247, %248 : vector<8x128xf32>
    %250 = math.tanh %244 : vector<8x128xf32>
    %251 = vector.extract_strided_slice %249 {offsets = [0, 0], sizes = [8, 32], strides = [1, 1]} : vector<8x128xf32> to vector<8x32xf32>
    %252 = vector.extract_strided_slice %249 {offsets = [0, 32], sizes = [8, 32], strides = [1, 1]} : vector<8x128xf32> to vector<8x32xf32>
    %253 = vector.extract_strided_slice %250 {offsets = [0, 64], sizes = [8, 32], strides = [1, 1]} : vector<8x128xf32> to vector<8x32xf32>
    %254 = vector.extract_strided_slice %249 {offsets = [0, 96], sizes = [8, 32], strides = [1, 1]} : vector<8x128xf32> to vector<8x32xf32>
    %255 = arith.mulf %252, %216 : vector<8x32xf32>
    %256 = arith.mulf %251, %253 : vector<8x32xf32>
    %257 = arith.addf %255, %256 : vector<8x32xf32>
    %258 = math.tanh %257 : vector<8x32xf32>
    %259 = arith.mulf %254, %258 : vector<8x32xf32>
    %260 = arith.truncf %259 : vector<8x32xf32> to vector<8x32xbf16>
    %c0_82 = arith.constant 0 : index
    %c32_83 = arith.constant 32 : index
    %261 = vector.load %arg9[%c0_82, %c32_83] : memref<8x64xbf16, #tpu.memory_space<vmem>>, vector<8x32xbf16>
    tpu.vector_store %arg9[%c0_82, %c32_83], %260 {strides = array<i32>} : memref<8x64xbf16, #tpu.memory_space<vmem>>, vector<8x32xbf16>,
    %c48 = arith.constant 48 : index
    %c0_84 = arith.constant 0 : index
    %262 = vector.load %arg10[%c48, %c0_84] : memref<64x128xf32, #tpu.memory_space<vmem>>, vector<8x128xf32>
    %263 = arith.truncf %239 : vector<8x32xf32> to vector<8x32xbf16>
    %cst_85 = arith.constant dense<0.000000e+00> : vector<8x128xf32>
    %264 = tpu.matmul %263, %0, %cst_85 {dimension_numbers = #tpu.dot_dimension_numbers<[1], [0], [0], [1], [0, 0, 1, 1], [], []>} : vector<8x32xbf16>, vector<32x128xbf16>, vector<8x128xf32> -> vector<8x128xf32>
    %265 = arith.addf %262, %264 : vector<8x128xf32>
    %266 = arith.negf %265 : vector<8x128xf32>
    %267 = math.exp %266 : vector<8x128xf32>
    %cst_86 = arith.constant 1.000000e+00 : f32
    %268 = vector.broadcast %cst_86 : f32 to vector<8x128xf32>
    %269 = arith.addf %268, %267 : vector<8x128xf32>
    %270 = arith.divf %268, %269 : vector<8x128xf32>
    %271 = math.tanh %265 : vector<8x128xf32>
    %272 = vector.extract_strided_slice %270 {offsets = [0, 0], sizes = [8, 32], strides = [1, 1]} : vector<8x128xf32> to vector<8x32xf32>
    %273 = vector.extract_strided_slice %270 {offsets = [0, 32], sizes = [8, 32], strides = [1, 1]} : vector<8x128xf32> to vector<8x32xf32>
    %274 = vector.extract_strided_slice %271 {offsets = [0, 64], sizes = [8, 32], strides = [1, 1]} : vector<8x128xf32> to vector<8x32xf32>
    %275 = vector.extract_strided_slice %270 {offsets = [0, 96], sizes = [8, 32], strides = [1, 1]} : vector<8x128xf32> to vector<8x32xf32>
    %276 = arith.mulf %273, %237 : vector<8x32xf32>
    %277 = arith.mulf %272, %274 : vector<8x32xf32>
    %278 = arith.addf %276, %277 : vector<8x32xf32>
    %279 = math.tanh %278 : vector<8x32xf32>
    %280 = arith.mulf %275, %279 : vector<8x32xf32>
    %281 = arith.truncf %280 : vector<8x32xf32> to vector<8x32xbf16>
    %c0_87 = arith.constant 0 : index
    %c0_88 = arith.constant 0 : index
    %282 = vector.load %arg9[%c0_87, %c0_88] : memref<8x64xbf16, #tpu.memory_space<vmem>>, vector<8x32xbf16>
    tpu.vector_store %arg9[%c0_87, %c0_88], %281 {strides = array<i32>} : memref<8x64xbf16, #tpu.memory_space<vmem>>, vector<8x32xbf16>,
    %c0_89 = arith.constant 0 : index
    %c0_90 = arith.constant 0 : index
    %283 = vector.load %arg9[%c0_89, %c0_90] : memref<8x64xbf16, #tpu.memory_space<vmem>>, vector<8x64xbf16>
    %cst_91 = arith.constant dense<0.000000e+00> : vector<8x128xf32>
    %284 = tpu.matmul %283, %1, %cst_91 {dimension_numbers = #tpu.dot_dimension_numbers<[1], [0], [0], [1], [0, 0, 1, 1], [], []>} : vector<8x64xbf16>, vector<64x128xbf16>, vector<8x128xf32> -> vector<8x128xf32>
    %285 = arith.addf %284, %4 : vector<8x128xf32>
    %286 = arith.negf %285 : vector<8x128xf32>
    %287 = math.exp %286 : vector<8x128xf32>
    %cst_92 = arith.constant 1.000000e+00 : f32
    %288 = vector.broadcast %cst_92 : f32 to vector<8x128xf32>
    %289 = arith.addf %288, %287 : vector<8x128xf32>
    %290 = arith.divf %288, %289 : vector<8x128xf32>
    %291 = math.tanh %285 : vector<8x128xf32>
    %292 = vector.extract_strided_slice %290 {offsets = [0, 0], sizes = [8, 32], strides = [1, 1]} : vector<8x128xf32> to vector<8x32xf32>
    %293 = vector.extract_strided_slice %290 {offsets = [0, 32], sizes = [8, 32], strides = [1, 1]} : vector<8x128xf32> to vector<8x32xf32>
    %294 = vector.extract_strided_slice %291 {offsets = [0, 64], sizes = [8, 32], strides = [1, 1]} : vector<8x128xf32> to vector<8x32xf32>
    %295 = vector.extract_strided_slice %290 {offsets = [0, 96], sizes = [8, 32], strides = [1, 1]} : vector<8x128xf32> to vector<8x32xf32>
    %296 = arith.mulf %293, %257 : vector<8x32xf32>
    %297 = arith.mulf %292, %294 : vector<8x32xf32>
    %298 = arith.addf %296, %297 : vector<8x32xf32>
    %299 = math.tanh %298 : vector<8x32xf32>
    %300 = arith.mulf %295, %299 : vector<8x32xf32>
    %301 = arith.truncf %300 : vector<8x32xf32> to vector<8x32xbf16>
    %c0_93 = arith.constant 0 : index
    %c32_94 = arith.constant 32 : index
    %302 = vector.load %arg9[%c0_93, %c32_94] : memref<8x64xbf16, #tpu.memory_space<vmem>>, vector<8x32xbf16>
    tpu.vector_store %arg9[%c0_93, %c32_94], %301 {strides = array<i32>} : memref<8x64xbf16, #tpu.memory_space<vmem>>, vector<8x32xbf16>,
    %c56 = arith.constant 56 : index
    %c0_95 = arith.constant 0 : index
    %303 = vector.load %arg10[%c56, %c0_95] : memref<64x128xf32, #tpu.memory_space<vmem>>, vector<8x128xf32>
    %304 = arith.truncf %280 : vector<8x32xf32> to vector<8x32xbf16>
    %cst_96 = arith.constant dense<0.000000e+00> : vector<8x128xf32>
    %305 = tpu.matmul %304, %0, %cst_96 {dimension_numbers = #tpu.dot_dimension_numbers<[1], [0], [0], [1], [0, 0, 1, 1], [], []>} : vector<8x32xbf16>, vector<32x128xbf16>, vector<8x128xf32> -> vector<8x128xf32>
    %306 = arith.addf %303, %305 : vector<8x128xf32>
    %307 = arith.negf %306 : vector<8x128xf32>
    %308 = math.exp %307 : vector<8x128xf32>
    %cst_97 = arith.constant 1.000000e+00 : f32
    %309 = vector.broadcast %cst_97 : f32 to vector<8x128xf32>
    %310 = arith.addf %309, %308 : vector<8x128xf32>
    %311 = arith.divf %309, %310 : vector<8x128xf32>
    %312 = math.tanh %306 : vector<8x128xf32>
    %313 = vector.extract_strided_slice %311 {offsets = [0, 0], sizes = [8, 32], strides = [1, 1]} : vector<8x128xf32> to vector<8x32xf32>
    %314 = vector.extract_strided_slice %311 {offsets = [0, 32], sizes = [8, 32], strides = [1, 1]} : vector<8x128xf32> to vector<8x32xf32>
    %315 = vector.extract_strided_slice %312 {offsets = [0, 64], sizes = [8, 32], strides = [1, 1]} : vector<8x128xf32> to vector<8x32xf32>
    %316 = vector.extract_strided_slice %311 {offsets = [0, 96], sizes = [8, 32], strides = [1, 1]} : vector<8x128xf32> to vector<8x32xf32>
    %317 = arith.mulf %314, %278 : vector<8x32xf32>
    %318 = arith.mulf %313, %315 : vector<8x32xf32>
    %319 = arith.addf %317, %318 : vector<8x32xf32>
    %320 = math.tanh %319 : vector<8x32xf32>
    %321 = arith.mulf %316, %320 : vector<8x32xf32>
    %322 = arith.truncf %321 : vector<8x32xf32> to vector<8x32xbf16>
    %c0_98 = arith.constant 0 : index
    %c0_99 = arith.constant 0 : index
    %323 = vector.load %arg9[%c0_98, %c0_99] : memref<8x64xbf16, #tpu.memory_space<vmem>>, vector<8x32xbf16>
    tpu.vector_store %arg9[%c0_98, %c0_99], %322 {strides = array<i32>} : memref<8x64xbf16, #tpu.memory_space<vmem>>, vector<8x32xbf16>,
    %c0_100 = arith.constant 0 : index
    %c0_101 = arith.constant 0 : index
    %324 = vector.load %arg9[%c0_100, %c0_101] : memref<8x64xbf16, #tpu.memory_space<vmem>>, vector<8x64xbf16>
    %cst_102 = arith.constant dense<0.000000e+00> : vector<8x128xf32>
    %325 = tpu.matmul %324, %1, %cst_102 {dimension_numbers = #tpu.dot_dimension_numbers<[1], [0], [0], [1], [0, 0, 1, 1], [], []>} : vector<8x64xbf16>, vector<64x128xbf16>, vector<8x128xf32> -> vector<8x128xf32>
    %326 = arith.addf %325, %4 : vector<8x128xf32>
    %327 = arith.negf %326 : vector<8x128xf32>
    %328 = math.exp %327 : vector<8x128xf32>
    %cst_103 = arith.constant 1.000000e+00 : f32
    %329 = vector.broadcast %cst_103 : f32 to vector<8x128xf32>
    %330 = arith.addf %329, %328 : vector<8x128xf32>
    %331 = arith.divf %329, %330 : vector<8x128xf32>
    %332 = math.tanh %326 : vector<8x128xf32>
    %333 = vector.extract_strided_slice %331 {offsets = [0, 0], sizes = [8, 32], strides = [1, 1]} : vector<8x128xf32> to vector<8x32xf32>
    %334 = vector.extract_strided_slice %331 {offsets = [0, 32], sizes = [8, 32], strides = [1, 1]} : vector<8x128xf32> to vector<8x32xf32>
    %335 = vector.extract_strided_slice %332 {offsets = [0, 64], sizes = [8, 32], strides = [1, 1]} : vector<8x128xf32> to vector<8x32xf32>
    %336 = vector.extract_strided_slice %331 {offsets = [0, 96], sizes = [8, 32], strides = [1, 1]} : vector<8x128xf32> to vector<8x32xf32>
    %337 = arith.mulf %334, %298 : vector<8x32xf32>
    %338 = arith.mulf %333, %335 : vector<8x32xf32>
    %339 = arith.addf %337, %338 : vector<8x32xf32>
    %340 = math.tanh %339 : vector<8x32xf32>
    %341 = arith.mulf %336, %340 : vector<8x32xf32>
    %342 = arith.truncf %341 : vector<8x32xf32> to vector<8x32xbf16>
    %c0_104 = arith.constant 0 : index
    %c32_105 = arith.constant 32 : index
    %343 = vector.load %arg9[%c0_104, %c32_105] : memref<8x64xbf16, #tpu.memory_space<vmem>>, vector<8x32xbf16>
    tpu.vector_store %arg9[%c0_104, %c32_105], %342 {strides = array<i32>} : memref<8x64xbf16, #tpu.memory_space<vmem>>, vector<8x32xbf16>,
    %344 = arith.truncf %341 : vector<8x32xf32> to vector<8x32xbf16>
    %c0_106 = arith.constant 0 : index
    %c0_107 = arith.constant 0 : index
    %345 = vector.load %arg6[%c0_106, %c0_107] : memref<32x128xbf16, #tpu.memory_space<vmem>>, vector<32x128xbf16>
    %cst_108 = arith.constant dense<0.000000e+00> : vector<8x128xf32>
    %346 = tpu.matmul %344, %345, %cst_108 {dimension_numbers = #tpu.dot_dimension_numbers<[1], [0], [0], [1], [0, 0, 1, 1], [], []>} : vector<8x32xbf16>, vector<32x128xbf16>, vector<8x128xf32> -> vector<8x128xf32>
    %c0_109 = arith.constant 0 : index
    %c0_110 = arith.constant 0 : index
    %347 = vector.load %arg7[%c0_109, %c0_110] : memref<1x128xf32, #tpu.memory_space<vmem>>, vector<1x128xf32>
    %348 = vector.broadcast %347 : vector<1x128xf32> to vector<8x128xf32>
    %349 = arith.addf %346, %348 : vector<8x128xf32>
    %c0_111 = arith.constant 0 : index
    %c0_112 = arith.constant 0 : index
    %350 = vector.load %arg8[%c0_111, %c0_112] : memref<8x128xf32, #tpu.memory_space<vmem>>, vector<8x128xf32>
    tpu.vector_store %arg8[%c0_111, %c0_112], %349 {strides = array<i32>} : memref<8x128xf32, #tpu.memory_space<vmem>>, vector<8x128xf32>,
    return
  }
}

</mosaic_0001>

<bundles_post_ra>
// kernel: lstm_price_predictor.1
= control target key start
LH: loop header
LB: loop body
LE: loop exit
PB: predicated region body
PF: predicated region fallthrough
CT: control target
= control target key end

     0   :  { %vm162_vm0 = vcmask 519168   ;;  %v1991_v0 = vmov 0.0   ;;  %vm1992_vm1 = vmmov 0   ;;  %v1993_v3 = vmov 0   ;;  %s1994_s19 = smov 64   ;;  %s1995_s20 = smov 32   ;;  %s2457_s1 = inlined_call_operand.vmem [shape: bf16[16,128], index: 1, kind: input, shape index: {}]   ;;  %s2458_s2 = inlined_call_operand.vmem [shape: bf16[32,128], index: 2, kind: input, shape index: {}]   ;;  %s2459_s0 = inlined_call_operand.vmem [shape: f32[64,16], index: 0, kind: input, shape index: {}]   ;;  %s2460_s3 = inlined_call_operand.vmem [shape: f32[1,128], index: 3, kind: input, shape index: {}]   ;;  %s2461_s4 = inlined_call_operand.vmem [shape: bf16[64,128], index: 4, kind: input, shape index: {}]   ;;  %s2462_s5 = inlined_call_operand.vmem [shape: f32[1,128], index: 5, kind: input, shape index: {}]   ;;  %s2463_s6 = inlined_call_operand.vmem [shape: bf16[32,128], index: 6, kind: input, shape index: {}]   ;;  %s2464_s7 = inlined_call_operand.vmem [shape: f32[1,128], index: 7, kind: input, shape index: {}]   ;;  %s2465_s8 = inlined_call_operand.vmem [shape: f32[8,128], index: 8, kind: output, shape index: {}]  }
   0x1   :  { %1677 = vmatprep.subr.bf16.mxu1 %v1991_v0  ;;  %v1850_v1 = vld [vmem:[%s2457_s1] sm:$0xff]   ;;  %1681 = vmatprep.mubr.msk.bf16.mxu1 %vm1992_vm1, %v1991_v0  ;;  %163 = vst.msk [vmem:[#allocation2] sm:$0xf] %vm162_vm0, %v1993_v3  ;;  %v50_v5 = vld [vmem:[%s2459_s0 + $0x8] sm:$0xff]  ;;  %vm76_vm2 = vcmask 130048   ;;  %v51_v6 = vld [vmem:[%s2459_s0 + $0x10] sm:$0xff] }
   0x2   :  { %v2050_v2 = vld [vmem:[%s2458_s2] sm:$0xff]   ;;  %1667 = vmatprep.subr.bf16.mxu0 %v1850_v1  ;;  %v52_v8 = vld [vmem:[%s2459_s0 + $0x18] sm:$0xff]  ;;  %v2069_v10 = vld [vmem:[%s2458_s2 + $0x8] sm:$0xff]   ;;  %vm253_vm3 = vcmask 257024   ;;  %vm177_vm4 = vcmask 261120   ;;  %vm280_vm5 = vcmask 523264  }
   0x3   :  { %v49_v4 = vld [vmem:[%s2459_s0] sm:$0xff]  ;;  %1678 = vmatpush3.bf16.msra.mxu1 %v2050_v2  ;;  %1668 = vmatpush3.bf16.msra.mxu0 %v1850_v1  ;;  %v58_v9 = vpack.c.bf16 %v52_v8, %v51_v6  ;;  %v54_v33 = vld [vmem:[%s2459_s0 + $0x28] sm:$0xff]  ;;  %v55_v34 = vld [vmem:[%s2459_s0 + $0x30] sm:$0xff]  ;;  %vm355_vm6 = vcmask 519424  }
   0x4   :  { %v57_v7 = vpack.c.bf16 %v50_v5, %v49_v4  ;;  %1679 = vmatprep.subr.bf16.mxu1 %v1991_v0  ;;  %1685 = vmatprep.subr.bf16.mxu0 %v1991_v0  ;;  %v2085_v11 = vld [vmem:[%s2460_s3] ss:$0 sm:$0xff]  ;;  %v2116_v37 = vld [vmem:[%s2461_s4 + $0x8] sm:$0xff]   ;;  %v56_v38 = vld [vmem:[%s2459_s0 + $0x38] sm:$0xff] }
   0x5   :  { %v53_v32 = vld [vmem:[%s2459_s0 + $0x20] sm:$0xff]  ;;  %v60_v39 = vpack.c.bf16 %v56_v38, %v55_v34  ;;  %v2133_v41 = vld [vmem:[%s2461_s4 + $0x10] sm:$0xff]   ;;  %v2140_v42 = vld [vmem:[%s2461_s4 + $0x18] sm:$0xff]  }
   0x6   :  { %1669 = vmatprep.mubr.msk.bf16.mxu0 %vm76_vm2, %v57_v7  ;;  %v2111_v35 = vld [vmem:[%s2461_s4] sm:$0xff]   ;;  %v59_v36 = vpack.c.bf16 %v54_v33, %v53_v32 }
   0x7   :  { %1670 = vmatmul.mubr.msk.bf16.vlgmr.msra.gmra.mrb[0].mxu0 %vm76_vm2, %v58_v9  ;;  %1680 = vmatpush3.bf16.msra.mxu1 %v2069_v10  ;;  %v2178_v59 = vld [vmem:[%s2462_s5] ss:$0 sm:$0xff] }
   0x8   :  { %1697 = vmatprep.subr.bf16.mxu1 %v1991_v0  ;;  %1686 = vmatpush3.bf16.msra.mxu0 %v2111_v35 }
   0x9   :  { %1673 = vmatprep.mubr.msk.bf16.mxu0 %vm76_vm2, %v59_v36  ;;  %1687 = vmatprep.subr.bf16.mxu0 %v1991_v0 }
   0xa   :  { %1682 = vmatmul.mubr.bf16.vlgmr.msra.gmra.mrb[0].mxu1 %v1993_v3 }
   0xb   :  { %1698 = vmatpush3.bf16.msra.mxu1 %v2050_v2  ;;  %1701 = vmatprep.mubr.msk.bf16.mxu1 %vm1992_vm1, %v1991_v0 }
   0xc   :  { %1699 = vmatprep.subr.bf16.mxu1 %v1991_v0  ;;  %1688 = vmatpush3.bf16.msra.mxu0 %v2116_v37 }
   0xd   :  { %1689 = vmatprep.subr.bf16.mxu0 %v1991_v0 }
   0xf   :  { %1700 = vmatpush3.bf16.msra.mxu1 %v2069_v10  ;;  %1674 = vmatmul.mubr.msk.bf16.gmra.mrb[4].mxu0 %vm76_vm2, %v60_v39 }
  0x10   :  { %1705 = vmatprep.subr.bf16.mxu1 %v1991_v0  ;;  %1693 = vmatprep.mubr.msk.bf16.mxu0 %vm1992_vm1, %v1991_v0 }
  0x11   :  { %1690 = vmatpush3.bf16.msra.mxu0 %v2133_v41 }
  0x12   :  { %1691 = vmatprep.subr.bf16.mxu0 %v1991_v0 }
  0x15   :  { %1692 = vmatpush3.bf16.msra.mxu0 %v2140_v42 }
  0x16   :  { %1717 = vmatprep.subr.bf16.mxu0 %v1991_v0 }
  0xda   :  { %v2087_v12 = vpop.f32.mrb[0].mxu0 }
  0xdb   :  { %v123_v13 = vpop.f32.mrb[1].mxu0 }
  0xdc   :  { %v124_v14 = vadd.f32 %v2085_v11, %v123_v13  ;;  %v2090_v15 = vpop.f32.mrb[2].mxu0 }
  0xdd   :  { %v2092_v16 = vpop.f32.mrb[3].mxu0  ;;  %v215_v17 = vpop.f32.mrb[0].mxu1 }
  0xde   :  { %v221_v18 = vadd.f32 %v215_v17, %v124_v14  ;;  %v1683_v19 = vpop.f32.mrb[1].mxu1  ;;  %v127_v53 = vadd.f32 %v2085_v11, %v2092_v16 }
  0xdf   :  { %v218_v20 = vpop.f32.mrb[2].mxu1 }
  0xe0   :  { %1859 = vtanh.f32 %v221_v18  ;;  %v1684_v21 = vpop.f32.mrb[3].mxu1  ;;  %v1524_v23 = vmul.f32 -1.442695, %v221_v18 }
  0xe2   :  { %1861 = vpow2.f32 %v1524_v23  ;;  %v2146_v46 = vpop.f32.mrb[4].mxu0 }
  0xe3   :  { %v2148_v47 = vpop.f32.mrb[5].mxu0 }
  0xe4   :  { %v2150_v48 = vpop.f32.mrb[6].mxu0 }
  0xe5   :  { %v2152_v49 = vpop.f32.mrb[7].mxu0 }
  0xea   :  { %v1860_v22 = vpop.eup %1859 }
  0xeb   :  { %231 = vrot.lane.b32.xlu0 %v1860_v22, %s1994_s19 }
  0xec   :  { %v1862_v24 = vpop.eup %1861 }
  0xed   :  { %v225_v25 = vadd.f32 1.0, %v1862_v24 }
  0xef   :  { %1863 = vrcp.f32 %v225_v25 }
  0xf9   :  { %v1864_v26 = vpop.eup %1863 }
  0xfa   :  { %v229_v29 = vmul.f32 0.0, %v1864_v26 }
 0x15d   :  { %v232_v27 = vpop.permute.xlu0 %231 }
 0x15e   :  { %v234_v28 = vmul.f32 %v1864_v26, %v232_v27 }
 0x160   :  { %236 = vrot.lane.b32.xlu0 %v234_v28, %s1995_s20 }
 0x1d2   :  { %v237_v30 = vpop.permute.xlu0 %236 }
 0x1d3   :  { %v2096_v31 = vadd.f32 %v237_v30, %v229_v29 }
 0x1d5   :  { %1865 = vtanh.f32 %v2096_v31 }
 0x1df   :  { %v1866_v40 = vpop.eup %1865 }
 0x1e0   :  { %242 = vrot.lane.b32.xlu1 %v1866_v40, %s1994_s19 }
 0x252   :  { %v243_v43 = vpop.permute.xlu1 %242 }
 0x253   :  { %v245_v44 = vmul.f32 %v1864_v26, %v243_v43  ;;  %v132_v43 = vadd.f32 %v2087_v12, %v2085_v11 }
 0x255   :  { %v246_v45 = vpack.c.bf16 %v245_v44, %v245_v44 }
 0x257   :  { %358 = vrot.lane.b32.xlu0 %v246_v45, %s1995_s20  ;;  %250 = vrot.lane.b32.xlu1 %v246_v45, %s1995_s20 }
 0x2c9   :  { %v359_v50 = vpop.permute.xlu0 %358  ;;  %v251_v51 = vpop.permute.xlu1 %250 }
 0x2ca   :  { %254 = vst.msk [vmem:[#allocation2] sm:$0xf] %vm253_vm3, %v251_v51  ;;  %1702 = vmatmul.mubr.msk.bf16.vlgmr.msra.gmra.mrb[4].mxu1 %vm177_vm4, %v359_v50 }
 0x2cb   :  { %1706 = vmatpush3.bf16.msra.mxu1 %v2111_v35  ;;  %1713 = vmatprep.mubr.msk.bf16.mxu1 %vm1992_vm1, %v1991_v0 }
 0x2cc   :  { %1707 = vmatprep.subr.bf16.mxu1 %v1991_v0 }
 0x2cf   :  { %1708 = vmatpush3.bf16.msra.mxu1 %v2116_v37 }
 0x2d0   :  { %1709 = vmatprep.subr.bf16.mxu1 %v1991_v0 }
 0x2d1   :  { %v255_v52 = vld [vmem:[#allocation2] sm:$0xf] }
 0x2d2   :  { %1694 = vmatmul.mubr.msk.bf16.vlgmr.msra.gmra.mrb[8].mxu0 %vm280_vm5, %v255_v52 }
 0x2d3   :  { %1718 = vmatpush3.bf16.msra.mxu0 %v2050_v2  ;;  %1710 = vmatpush3.bf16.msra.mxu1 %v2133_v41 }
 0x2d4   :  { %1719 = vmatprep.subr.bf16.mxu0 %v1991_v0  ;;  %1721 = vmatprep.mubr.msk.bf16.mxu0 %vm1992_vm1, %v1991_v0 }
 0x2d5   :  { %1711 = vmatprep.subr.bf16.mxu1 %v1991_v0 }
 0x2d7   :  { %1720 = vmatpush3.bf16.msra.mxu0 %v2069_v10  ;;  %1712 = vmatpush3.bf16.msra.mxu1 %v2140_v42 }
 0x2d8   :  { %1725 = vmatprep.subr.bf16.mxu0 %v1991_v0  ;;  %1737 = vmatprep.subr.bf16.mxu1 %v1991_v0 }
 0x39d   :  { %v397_v54 = vpop.f32.mrb[4].mxu1 }
 0x39e   :  { %v403_v55 = vadd.f32 %v397_v54, %v127_v53  ;;  %v1703_v56 = vpop.f32.mrb[5].mxu1 }
 0x39f   :  { %v400_v57 = vpop.f32.mrb[6].mxu1 }
 0x3a0   :  { %1867 = vtanh.f32 %v403_v55  ;;  %v1704_v58 = vpop.f32.mrb[7].mxu1  ;;  %v1534_v5 = vmul.f32 -1.442695, %v403_v55 }
 0x3a5   :  { %v318_v60 = vpop.f32.mrb[8].mxu0 }
 0x3a6   :  { %v319_v61 = vadd.f32 %v2178_v59, %v318_v60  ;;  %v1695_v62 = vpop.f32.mrb[9].mxu0 }
 0x3a7   :  { %v321_v63 = vpop.f32.mrb[10].mxu0 }
 0x3a8   :  { %1869 = vtanh.f32 %v319_v61  ;;  %v1696_v1 = vpop.f32.mrb[11].mxu0  ;;  %v1531_v6 = vmul.f32 -1.442695, %v319_v61 }
 0x3a9   :  { %1871 = vpow2.f32 %v1534_v5 }
 0x3aa   :  { %v1868_v3 = vpop.eup %1867  ;;  %1873 = vpow2.f32 %v1531_v6 }
 0x3ab   :  { %413 = vrot.lane.b32.xlu0 %v1868_v3, %s1994_s19 }
 0x3b2   :  { %v1870_v4 = vpop.eup %1869 }
 0x3b3   :  { %333 = vrot.lane.b32.xlu1 %v1870_v4, %s1994_s19  ;;  %v1872_v7 = vpop.eup %1871 }
 0x3b4   :  { %v407_v8 = vadd.f32 1.0, %v1872_v7  ;;  %v1874_v9 = vpop.eup %1873 }
 0x3b5   :  { %v327_v13 = vadd.f32 1.0, %v1874_v9 }
 0x3b6   :  { %1875 = vrcp.f32 %v407_v8 }
 0x3b7   :  { %1877 = vrcp.f32 %v327_v13 }
 0x3c0   :  { %v1876_v14 = vpop.eup %1875 }
 0x3c1   :  { %v1878_v18 = vpop.eup %1877  ;;  %v411_v21 = vmul.f32 %v1876_v14, %v2096_v31 }
 0x3c2   :  { %v331_v24 = vmul.f32 0.0, %v1878_v18 }
 0x41d   :  { %v414_v16 = vpop.permute.xlu0 %413 }
 0x41e   :  { %v416_v17 = vmul.f32 %v1876_v14, %v414_v16 }
 0x420   :  { %418 = vrot.lane.b32.xlu0 %v416_v17, %s1995_s20 }
 0x425   :  { %v334_v19 = vpop.permute.xlu1 %333 }
 0x426   :  { %v336_v20 = vmul.f32 %v1878_v18, %v334_v19 }
 0x428   :  { %338 = vrot.lane.b32.xlu1 %v336_v20, %s1995_s20 }
 0x492   :  { %v419_v22 = vpop.permute.xlu0 %418 }
 0x493   :  { %v2186_v23 = vadd.f32 %v419_v22, %v411_v21 }
 0x495   :  { %1879 = vtanh.f32 %v2186_v23 }
 0x49a   :  { %v339_v25 = vpop.permute.xlu1 %338 }
 0x49b   :  { %v2189_v26 = vadd.f32 %v339_v25, %v331_v24 }
 0x49d   :  { %1881 = vtanh.f32 %v2189_v26 }
 0x49f   :  { %v1880_v27 = vpop.eup %1879 }
 0x4a0   :  { %424 = vrot.lane.b32.xlu0 %v1880_v27, %s1994_s19 }
 0x4a7   :  { %v1882_v28 = vpop.eup %1881 }
 0x4a8   :  { %344 = vrot.lane.b32.xlu1 %v1882_v28, %s1994_s19 }
 0x512   :  { %v425_v29 = vpop.permute.xlu0 %424 }
 0x513   :  { %v427_v30 = vmul.f32 %v1876_v14, %v425_v29 }
 0x515   :  { %v428_v31 = vpack.c.bf16 %v427_v30, %v427_v30 }
 0x517   :  { %432 = vrot.lane.b32.xlu0 %v428_v31, %s1995_s20 }
 0x51a   :  { %v345_v32 = vpop.permute.xlu1 %344 }
 0x51b   :  { %v347_v33 = vmul.f32 %v1878_v18, %v345_v32  ;;  %v135_v32 = vadd.f32 %v2090_v15, %v2085_v11 }
 0x51d   :  { %v1580_v34 = vpack.c.bf16 %v347_v33, %v347_v33 }
 0x51f   :  { %352 = vrot.lane.b32.xlu1 %v1580_v34, %s1994_s19 }
 0x523   :  { %513 = vrot.lane.b32.xlu1 %v428_v31, %s1995_s20 }
 0x589   :  { %v433_v38 = vpop.permute.xlu0 %432 }
 0x591   :  { %v353_v36 = vpop.permute.xlu1 %352 }
 0x592   :  { %356 = vst.msk [vmem:[#allocation2] sm:$0xf] %vm355_vm6, %v353_v36 }
 0x593   :  { %435 = vst.msk [vmem:[#allocation2] sm:$0xf] %vm253_vm3, %v433_v38 }
 0x595   :  { %v514_v39 = vpop.permute.xlu1 %513 }
 0x596   :  { %1722 = vmatmul.mubr.msk.bf16.vlgmr.msra.gmra.mrb[12].mxu0 %vm177_vm4, %v514_v39 }
 0x597   :  { %1726 = vmatpush3.bf16.msra.mxu0 %v2111_v35  ;;  %1733 = vmatprep.mubr.msk.bf16.mxu0 %vm1992_vm1, %v1991_v0 }
 0x598   :  { %1727 = vmatprep.subr.bf16.mxu0 %v1991_v0 }
 0x59a   :  { %v436_v40 = vld [vmem:[#allocation2] sm:$0xf] }
 0x59b   :  { %1714 = vmatmul.mubr.msk.bf16.vlgmr.msra.gmra.mrb[8].mxu1 %vm280_vm5, %v436_v40  ;;  %1728 = vmatpush3.bf16.msra.mxu0 %v2116_v37 }
 0x59c   :  { %1738 = vmatpush3.bf16.msra.mxu1 %v2050_v2  ;;  %1729 = vmatprep.subr.bf16.mxu0 %v1991_v0 }
 0x59d   :  { %1739 = vmatprep.subr.bf16.mxu1 %v1991_v0  ;;  %1741 = vmatprep.mubr.msk.bf16.mxu1 %vm1992_vm1, %v1991_v0 }
 0x59f   :  { %1730 = vmatpush3.bf16.msra.mxu0 %v2133_v41 }
 0x5a0   :  { %1740 = vmatpush3.bf16.msra.mxu1 %v2069_v10  ;;  %1731 = vmatprep.subr.bf16.mxu0 %v1991_v0 }
 0x5a1   :  { %1745 = vmatprep.subr.bf16.mxu1 %v1991_v0 }
 0x5a3   :  { %1732 = vmatpush3.bf16.msra.mxu0 %v2140_v42 }
 0x5a4   :  { %1757 = vmatprep.subr.bf16.mxu0 %v1991_v0 }
 0x669   :  { %v552_v44 = vpop.f32.mrb[12].mxu0 }
 0x66a   :  { %v558_v45 = vadd.f32 %v552_v44, %v132_v43  ;;  %v1723_v50 = vpop.f32.mrb[13].mxu0 }
 0x66b   :  { %v555_v51 = vpop.f32.mrb[14].mxu0 }
 0x66c   :  { %1883 = vtanh.f32 %v558_v45  ;;  %v1724_v52 = vpop.f32.mrb[15].mxu0  ;;  %v1540_v12 = vmul.f32 -1.442695, %v558_v45 }
 0x66e   :  { %v474_v53 = vpop.f32.mrb[8].mxu1 }
 0x66f   :  { %v475_v54 = vadd.f32 %v2178_v59, %v474_v53  ;;  %v1715_v55 = vpop.f32.mrb[9].mxu1 }
 0x670   :  { %v477_v56 = vpop.f32.mrb[10].mxu1 }
 0x671   :  { %1885 = vtanh.f32 %v475_v54  ;;  %v1716_v57 = vpop.f32.mrb[11].mxu1  ;;  %v1537_v61 = vmul.f32 -1.442695, %v475_v54 }
 0x672   :  { %1887 = vpow2.f32 %v1540_v12 }
 0x673   :  { %1889 = vpow2.f32 %v1537_v61 }
 0x676   :  { %v1884_v58 = vpop.eup %1883 }
 0x677   :  { %568 = vrot.lane.b32.xlu1 %v1884_v58, %s1994_s19 }
 0x67b   :  { %v1886_v60 = vpop.eup %1885 }
 0x67c   :  { %489 = vrot.lane.b32.xlu0 %v1886_v60, %s1994_s19  ;;  %v1888_v62 = vpop.eup %1887 }
 0x67d   :  { %v562_v63 = vadd.f32 1.0, %v1888_v62  ;;  %v1890_v1 = vpop.eup %1889 }
 0x67e   :  { %v483_v3 = vadd.f32 1.0, %v1890_v1 }
 0x67f   :  { %1891 = vrcp.f32 %v562_v63 }
 0x680   :  { %1893 = vrcp.f32 %v483_v3 }
 0x689   :  { %v1892_v4 = vpop.eup %1891 }
 0x68a   :  { %v1894_v7 = vpop.eup %1893  ;;  %v566_v13 = vmul.f32 %v1892_v4, %v2186_v23 }
 0x68b   :  { %v487_v17 = vmul.f32 %v1894_v7, %v2189_v26 }
 0x6e9   :  { %v569_v5 = vpop.permute.xlu1 %568 }
 0x6ea   :  { %v571_v6 = vmul.f32 %v1892_v4, %v569_v5 }
 0x6ec   :  { %573 = vrot.lane.b32.xlu1 %v571_v6, %s1995_s20 }
 0x6ee   :  { %v490_v8 = vpop.permute.xlu0 %489 }
 0x6ef   :  { %v492_v9 = vmul.f32 %v1894_v7, %v490_v8 }
 0x6f1   :  { %494 = vrot.lane.b32.xlu0 %v492_v9, %s1995_s20 }
 0x75e   :  { %v574_v14 = vpop.permute.xlu1 %573 }
 0x75f   :  { %v2225_v16 = vadd.f32 %v574_v14, %v566_v13 }
 0x761   :  { %1895 = vtanh.f32 %v2225_v16 }
 0x763   :  { %v495_v18 = vpop.permute.xlu0 %494 }
 0x764   :  { %v2229_v19 = vadd.f32 %v495_v18, %v487_v17 }
 0x766   :  { %1897 = vtanh.f32 %v2229_v19 }
 0x76b   :  { %v1896_v20 = vpop.eup %1895 }
 0x76c   :  { %579 = vrot.lane.b32.xlu1 %v1896_v20, %s1994_s19 }
 0x770   :  { %v1898_v21 = vpop.eup %1897 }
 0x771   :  { %500 = vrot.lane.b32.xlu0 %v1898_v21, %s1994_s19 }
 0x7de   :  { %v580_v22 = vpop.permute.xlu1 %579 }
 0x7df   :  { %v582_v23 = vmul.f32 %v1892_v4, %v580_v22 }
 0x7e1   :  { %v583_v24 = vpack.c.bf16 %v582_v23, %v582_v23 }
 0x7e3   :  { %v501_v25 = vpop.permute.xlu0 %500  ;;  %587 = vrot.lane.b32.xlu1 %v583_v24, %s1995_s20 }
 0x7e4   :  { %v503_v27 = vmul.f32 %v1894_v7, %v501_v25 }
 0x7e6   :  { %v1582_v28 = vpack.c.bf16 %v503_v27, %v503_v27 }
 0x7e8   :  { %508 = vrot.lane.b32.xlu0 %v1582_v28, %s1994_s19 }
 0x7ec   :  { %668 = vrot.lane.b32.xlu0 %v583_v24, %s1995_s20  ;;  %v140_v24 = vadd.f32 %v2085_v11, %v2148_v47 }
 0x855   :  { %v588_v29 = vpop.permute.xlu1 %587 }
 0x85a   :  { %v509_v26 = vpop.permute.xlu0 %508 }
 0x85b   :  { %511 = vst.msk [vmem:[#allocation2] sm:$0xf] %vm355_vm6, %v509_v26 }
 0x85c   :  { %590 = vst.msk [vmem:[#allocation2] sm:$0xf] %vm253_vm3, %v588_v29 }
 0x85e   :  { %v669_v30 = vpop.permute.xlu0 %668 }
 0x85f   :  { %1742 = vmatmul.mubr.msk.bf16.vlgmr.msra.gmra.mrb[12].mxu1 %vm177_vm4, %v669_v30 }
 0x860   :  { %1746 = vmatpush3.bf16.msra.mxu1 %v2111_v35  ;;  %1753 = vmatprep.mubr.msk.bf16.mxu1 %vm1992_vm1, %v1991_v0 }
 0x861   :  { %1747 = vmatprep.subr.bf16.mxu1 %v1991_v0 }
 0x863   :  { %v591_v31 = vld [vmem:[#allocation2] sm:$0xf] }
 0x864   :  { %1734 = vmatmul.mubr.msk.bf16.vlgmr.msra.gmra.mrb[16].mxu0 %vm280_vm5, %v591_v31  ;;  %1748 = vmatpush3.bf16.msra.mxu1 %v2116_v37 }
 0x865   :  { %1758 = vmatpush3.bf16.msra.mxu0 %v2050_v2  ;;  %1749 = vmatprep.subr.bf16.mxu1 %v1991_v0 }
 0x866   :  { %1759 = vmatprep.subr.bf16.mxu0 %v1991_v0  ;;  %1761 = vmatprep.mubr.msk.bf16.mxu0 %vm1992_vm1, %v1991_v0 }
 0x868   :  { %1750 = vmatpush3.bf16.msra.mxu1 %v2133_v41 }
 0x869   :  { %1760 = vmatpush3.bf16.msra.mxu0 %v2069_v10  ;;  %1751 = vmatprep.subr.bf16.mxu1 %v1991_v0 }
 0x86a   :  { %1765 = vmatprep.subr.bf16.mxu0 %v1991_v0 }
 0x86c   :  { %1752 = vmatpush3.bf16.msra.mxu1 %v2140_v42 }
 0x86d   :  { %1777 = vmatprep.subr.bf16.mxu1 %v1991_v0 }
 0x932   :  { %v707_v33 = vpop.f32.mrb[12].mxu1 }
 0x933   :  { %v713_v34 = vadd.f32 %v707_v33, %v135_v32  ;;  %v1743_v36 = vpop.f32.mrb[13].mxu1 }
 0x934   :  { %v710_v38 = vpop.f32.mrb[14].mxu1 }
 0x935   :  { %1899 = vtanh.f32 %v713_v34  ;;  %v1744_v39 = vpop.f32.mrb[15].mxu1  ;;  %v1546_v15 = vmul.f32 -1.442695, %v713_v34 }
 0x937   :  { %v629_v40 = vpop.f32.mrb[16].mxu0 }
 0x938   :  { %v630_v43 = vadd.f32 %v2178_v59, %v629_v40  ;;  %v1735_v44 = vpop.f32.mrb[17].mxu0 }
 0x939   :  { %v632_v45 = vpop.f32.mrb[18].mxu0 }
 0x93a   :  { %1901 = vtanh.f32 %v630_v43  ;;  %v1736_v50 = vpop.f32.mrb[19].mxu0  ;;  %v1543_v53 = vmul.f32 -1.442695, %v630_v43 }
 0x93b   :  { %1903 = vpow2.f32 %v1546_v15 }
 0x93c   :  { %1905 = vpow2.f32 %v1543_v53 }
 0x93f   :  { %v1900_v51 = vpop.eup %1899 }
 0x940   :  { %723 = vrot.lane.b32.xlu0 %v1900_v51, %s1994_s19 }
 0x944   :  { %v1902_v52 = vpop.eup %1901 }
 0x945   :  { %644 = vrot.lane.b32.xlu1 %v1902_v52, %s1994_s19  ;;  %v1904_v54 = vpop.eup %1903 }
 0x946   :  { %v717_v55 = vadd.f32 1.0, %v1904_v54  ;;  %v1906_v56 = vpop.eup %1905 }
 0x947   :  { %v638_v57 = vadd.f32 1.0, %v1906_v56 }
 0x948   :  { %1907 = vrcp.f32 %v717_v55 }
 0x949   :  { %1909 = vrcp.f32 %v638_v57 }
 0x952   :  { %v1908_v58 = vpop.eup %1907 }
 0x953   :  { %v1910_v61 = vpop.eup %1909  ;;  %v721_v1 = vmul.f32 %v1908_v58, %v2225_v16 }
 0x954   :  { %v642_v5 = vmul.f32 %v1910_v61, %v2229_v19 }
 0x9b2   :  { %v724_v60 = vpop.permute.xlu0 %723 }
 0x9b3   :  { %v726_v12 = vmul.f32 %v1908_v58, %v724_v60 }
 0x9b5   :  { %728 = vrot.lane.b32.xlu0 %v726_v12, %s1995_s20 }
 0x9b7   :  { %v645_v62 = vpop.permute.xlu1 %644 }
 0x9b8   :  { %v647_v63 = vmul.f32 %v1910_v61, %v645_v62 }
 0x9ba   :  { %649 = vrot.lane.b32.xlu1 %v647_v63, %s1995_s20 }
 0xa27   :  { %v729_v3 = vpop.permute.xlu0 %728 }
 0xa28   :  { %v2265_v4 = vadd.f32 %v729_v3, %v721_v1 }
 0xa2a   :  { %1911 = vtanh.f32 %v2265_v4 }
 0xa2c   :  { %v650_v6 = vpop.permute.xlu1 %649 }
 0xa2d   :  { %v2269_v7 = vadd.f32 %v650_v6, %v642_v5 }
 0xa2f   :  { %1913 = vtanh.f32 %v2269_v7 }
 0xa34   :  { %v1912_v8 = vpop.eup %1911 }
 0xa35   :  { %734 = vrot.lane.b32.xlu0 %v1912_v8, %s1994_s19 }
 0xa39   :  { %v1914_v9 = vpop.eup %1913 }
 0xa3a   :  { %655 = vrot.lane.b32.xlu1 %v1914_v9, %s1994_s19 }
 0xaa7   :  { %v735_v13 = vpop.permute.xlu0 %734 }
 0xaa8   :  { %v737_v14 = vmul.f32 %v1908_v58, %v735_v13 }
 0xaaa   :  { %v738_v16 = vpack.c.bf16 %v737_v14, %v737_v14  ;;  %v143_v14 = vadd.f32 %v2085_v11, %v2152_v49 }
 0xaac   :  { %742 = vrot.lane.b32.xlu0 %v738_v16, %s1995_s20  ;;  %v656_v17 = vpop.permute.xlu1 %655 }
 0xaad   :  { %v658_v18 = vmul.f32 %v1910_v61, %v656_v17 }
 0xaaf   :  { %v1584_v20 = vpack.c.bf16 %v658_v18, %v658_v18 }
 0xab1   :  { %663 = vrot.lane.b32.xlu1 %v1584_v20, %s1994_s19 }
 0xab5   :  { %823 = vrot.lane.b32.xlu1 %v738_v16, %s1995_s20 }
 0xb1e   :  { %v743_v21 = vpop.permute.xlu0 %742 }
 0xb23   :  { %v664_v19 = vpop.permute.xlu1 %663 }
 0xb24   :  { %666 = vst.msk [vmem:[#allocation2] sm:$0xf] %vm355_vm6, %v664_v19 }
 0xb25   :  { %745 = vst.msk [vmem:[#allocation2] sm:$0xf] %vm253_vm3, %v743_v21 }
 0xb27   :  { %v824_v22 = vpop.permute.xlu1 %823 }
 0xb28   :  { %1762 = vmatmul.mubr.msk.bf16.vlgmr.msra.gmra.mrb[20].mxu0 %vm177_vm4, %v824_v22 }
 0xb29   :  { %1766 = vmatpush3.bf16.msra.mxu0 %v2111_v35  ;;  %1773 = vmatprep.mubr.msk.bf16.mxu0 %vm1992_vm1, %v1991_v0 }
 0xb2a   :  { %1767 = vmatprep.subr.bf16.mxu0 %v1991_v0 }
 0xb2c   :  { %v746_v23 = vld [vmem:[#allocation2] sm:$0xf] }
 0xb2d   :  { %1754 = vmatmul.mubr.msk.bf16.vlgmr.msra.gmra.mrb[16].mxu1 %vm280_vm5, %v746_v23  ;;  %1768 = vmatpush3.bf16.msra.mxu0 %v2116_v37 }
 0xb2e   :  { %1778 = vmatpush3.bf16.msra.mxu1 %v2050_v2  ;;  %1769 = vmatprep.subr.bf16.mxu0 %v1991_v0 }
 0xb2f   :  { %1779 = vmatprep.subr.bf16.mxu1 %v1991_v0  ;;  %1781 = vmatprep.mubr.msk.bf16.mxu1 %vm1992_vm1, %v1991_v0 }
 0xb31   :  { %1770 = vmatpush3.bf16.msra.mxu0 %v2133_v41 }
 0xb32   :  { %1780 = vmatpush3.bf16.msra.mxu1 %v2069_v10  ;;  %1771 = vmatprep.subr.bf16.mxu0 %v1991_v0 }
 0xb33   :  { %1785 = vmatprep.subr.bf16.mxu1 %v1991_v0 }
 0xb35   :  { %1772 = vmatpush3.bf16.msra.mxu0 %v2140_v42 }
 0xb36   :  { %1797 = vmatprep.subr.bf16.mxu0 %v1991_v0 }
 0xbfb   :  { %v862_v25 = vpop.f32.mrb[20].mxu0 }
 0xbfc   :  { %v868_v27 = vadd.f32 %v862_v25, %v140_v24  ;;  %v1763_v28 = vpop.f32.mrb[21].mxu0 }
 0xbfd   :  { %v865_v26 = vpop.f32.mrb[22].mxu0 }
 0xbfe   :  { %1915 = vtanh.f32 %v868_v27  ;;  %v1764_v29 = vpop.f32.mrb[23].mxu0  ;;  %v1552_v47 = vmul.f32 -1.442695, %v868_v27 }
 0xc00   :  { %v784_v30 = vpop.f32.mrb[16].mxu1 }
 0xc01   :  { %v785_v31 = vadd.f32 %v2178_v59, %v784_v30  ;;  %v1755_v32 = vpop.f32.mrb[17].mxu1 }
 0xc02   :  { %v787_v33 = vpop.f32.mrb[18].mxu1 }
 0xc03   :  { %1917 = vtanh.f32 %v785_v31  ;;  %v1756_v34 = vpop.f32.mrb[19].mxu1  ;;  %v1549_v39 = vmul.f32 -1.442695, %v785_v31 }
 0xc04   :  { %1919 = vpow2.f32 %v1552_v47 }
 0xc05   :  { %1921 = vpow2.f32 %v1549_v39 }
 0xc08   :  { %v1916_v36 = vpop.eup %1915 }
 0xc09   :  { %878 = vrot.lane.b32.xlu1 %v1916_v36, %s1994_s19 }
 0xc0d   :  { %v1918_v38 = vpop.eup %1917 }
 0xc0e   :  { %799 = vrot.lane.b32.xlu0 %v1918_v38, %s1994_s19  ;;  %v1920_v40 = vpop.eup %1919 }
 0xc0f   :  { %v872_v43 = vadd.f32 1.0, %v1920_v40  ;;  %v1922_v44 = vpop.eup %1921 }
 0xc10   :  { %v793_v45 = vadd.f32 1.0, %v1922_v44 }
 0xc11   :  { %1923 = vrcp.f32 %v872_v43 }
 0xc12   :  { %1925 = vrcp.f32 %v793_v45 }
 0xc1b   :  { %v1924_v50 = vpop.eup %1923 }
 0xc1c   :  { %v1926_v15 = vpop.eup %1925  ;;  %v876_v55 = vmul.f32 %v1924_v50, %v2265_v4 }
 0xc1d   :  { %v797_v58 = vmul.f32 %v1926_v15, %v2269_v7 }
 0xc7b   :  { %v879_v51 = vpop.permute.xlu1 %878 }
 0xc7c   :  { %v881_v52 = vmul.f32 %v1924_v50, %v879_v51 }
 0xc7e   :  { %883 = vrot.lane.b32.xlu1 %v881_v52, %s1995_s20 }
 0xc80   :  { %v800_v53 = vpop.permute.xlu0 %799 }
 0xc81   :  { %v802_v54 = vmul.f32 %v1926_v15, %v800_v53 }
 0xc83   :  { %804 = vrot.lane.b32.xlu0 %v802_v54, %s1995_s20 }
 0xcf0   :  { %v884_v56 = vpop.permute.xlu1 %883 }
 0xcf1   :  { %v2305_v57 = vadd.f32 %v884_v56, %v876_v55 }
 0xcf3   :  { %1927 = vtanh.f32 %v2305_v57 }
 0xcf5   :  { %v805_v60 = vpop.permute.xlu0 %804 }
 0xcf6   :  { %v2309_v12 = vadd.f32 %v805_v60, %v797_v58 }
 0xcf8   :  { %1929 = vtanh.f32 %v2309_v12 }
 0xcfd   :  { %v1928_v61 = vpop.eup %1927 }
 0xcfe   :  { %889 = vrot.lane.b32.xlu1 %v1928_v61, %s1994_s19 }
 0xd02   :  { %v1930_v62 = vpop.eup %1929 }
 0xd03   :  { %810 = vrot.lane.b32.xlu0 %v1930_v62, %s1994_s19 }
 0xd70   :  { %v890_v63 = vpop.permute.xlu1 %889 }
 0xd71   :  { %v892_v1 = vmul.f32 %v1924_v50, %v890_v63 }
 0xd73   :  { %v893_v3 = vpack.c.bf16 %v892_v1, %v892_v1 }
 0xd75   :  { %v811_v4 = vpop.permute.xlu0 %810  ;;  %897 = vrot.lane.b32.xlu1 %v893_v3, %s1995_s20 }
 0xd76   :  { %v813_v5 = vmul.f32 %v1926_v15, %v811_v4 }
 0xd78   :  { %v1586_v6 = vpack.c.bf16 %v813_v5, %v813_v5 }
 0xd7a   :  { %818 = vrot.lane.b32.xlu0 %v1586_v6, %s1994_s19 }
 0xd7e   :  { %978 = vrot.lane.b32.xlu0 %v893_v3, %s1995_s20 }
 0xde7   :  { %v898_v8 = vpop.permute.xlu1 %897 }
 0xdec   :  { %v819_v7 = vpop.permute.xlu0 %818 }
 0xded   :  { %821 = vst.msk [vmem:[#allocation2] sm:$0xf] %vm355_vm6, %v819_v7 }
 0xdee   :  { %900 = vst.msk [vmem:[#allocation2] sm:$0xf] %vm253_vm3, %v898_v8 }
 0xdf0   :  { %v979_v9 = vpop.permute.xlu0 %978 }
 0xdf1   :  { %1782 = vmatmul.mubr.msk.bf16.vlgmr.msra.gmra.mrb[20].mxu1 %vm177_vm4, %v979_v9 }
 0xdf2   :  { %1786 = vmatpush3.bf16.msra.mxu1 %v2111_v35  ;;  %1793 = vmatprep.mubr.msk.bf16.mxu1 %vm1992_vm1, %v1991_v0 }
 0xdf3   :  { %1787 = vmatprep.subr.bf16.mxu1 %v1991_v0 }
 0xdf5   :  { %v901_v13 = vld [vmem:[#allocation2] sm:$0xf] }
 0xdf6   :  { %1774 = vmatmul.mubr.msk.bf16.vlgmr.msra.gmra.mrb[24].mxu0 %vm280_vm5, %v901_v13  ;;  %1788 = vmatpush3.bf16.msra.mxu1 %v2116_v37 }
 0xdf7   :  { %1798 = vmatpush3.bf16.msra.mxu0 %v2050_v2  ;;  %1789 = vmatprep.subr.bf16.mxu1 %v1991_v0 }
 0xdf8   :  { %1799 = vmatprep.subr.bf16.mxu0 %v1991_v0  ;;  %1801 = vmatprep.mubr.msk.bf16.mxu0 %vm1992_vm1, %v1991_v0 }
 0xdfa   :  { %1790 = vmatpush3.bf16.msra.mxu1 %v2133_v41 }
 0xdfb   :  { %1800 = vmatpush3.bf16.msra.mxu0 %v2069_v10  ;;  %1791 = vmatprep.subr.bf16.mxu1 %v1991_v0 }
 0xdfc   :  { %1805 = vmatprep.subr.bf16.mxu0 %v1991_v0 }
 0xdfe   :  { %1792 = vmatpush3.bf16.msra.mxu1 %v2140_v42 }
 0xdff   :  { %1817 = vmatprep.subr.bf16.mxu1 %v1991_v0 }
 0xec4   :  { %v1017_v16 = vpop.f32.mrb[20].mxu1 }
 0xec5   :  { %v1023_v17 = vadd.f32 %v1017_v16, %v143_v14  ;;  %v1783_v18 = vpop.f32.mrb[21].mxu1 }
 0xec6   :  { %v1020_v20 = vpop.f32.mrb[22].mxu1 }
 0xec7   :  { %1931 = vtanh.f32 %v1023_v17  ;;  %v1784_v19 = vpop.f32.mrb[23].mxu1  ;;  %v1558_v49 = vmul.f32 -1.442695, %v1023_v17 }
 0xec9   :  { %v939_v21 = vpop.f32.mrb[24].mxu0 }
 0xeca   :  { %v940_v22 = vadd.f32 %v2178_v59, %v939_v21  ;;  %v1775_v23 = vpop.f32.mrb[25].mxu0 }
 0xecb   :  { %v942_v24 = vpop.f32.mrb[26].mxu0 }
 0xecc   :  { %1933 = vtanh.f32 %v940_v22  ;;  %v1776_v25 = vpop.f32.mrb[27].mxu0  ;;  %v1555_v26 = vmul.f32 -1.442695, %v940_v22 }
 0xecd   :  { %1935 = vpow2.f32 %v1558_v49 }
 0xece   :  { %1937 = vpow2.f32 %v1555_v26 }
 0xed1   :  { %v1932_v27 = vpop.eup %1931 }
 0xed2   :  { %1033 = vrot.lane.b32.xlu0 %v1932_v27, %s1994_s19 }
 0xed6   :  { %v1934_v28 = vpop.eup %1933 }
 0xed7   :  { %954 = vrot.lane.b32.xlu1 %v1934_v28, %s1994_s19  ;;  %v1936_v29 = vpop.eup %1935 }
 0xed8   :  { %v1027_v30 = vadd.f32 1.0, %v1936_v29  ;;  %v1938_v31 = vpop.eup %1937 }
 0xed9   :  { %v948_v32 = vadd.f32 1.0, %v1938_v31 }
 0xeda   :  { %1939 = vrcp.f32 %v1027_v30 }
 0xedb   :  { %1941 = vrcp.f32 %v948_v32 }
 0xee4   :  { %v1940_v33 = vpop.eup %1939 }
 0xee5   :  { %v1942_v38 = vpop.eup %1941  ;;  %v1031_v40 = vmul.f32 %v1940_v33, %v2305_v57 }
 0xee6   :  { %v952_v45 = vmul.f32 %v1942_v38, %v2309_v12 }
 0xf44   :  { %v1034_v34 = vpop.permute.xlu0 %1033 }
 0xf45   :  { %v1036_v36 = vmul.f32 %v1940_v33, %v1034_v34 }
 0xf47   :  { %1038 = vrot.lane.b32.xlu0 %v1036_v36, %s1995_s20 }
 0xf49   :  { %v955_v47 = vpop.permute.xlu1 %954 }
 0xf4a   :  { %v957_v39 = vmul.f32 %v1942_v38, %v955_v47 }
 0xf4c   :  { %959 = vrot.lane.b32.xlu1 %v957_v39, %s1995_s20 }
 0xfb9   :  { %v1039_v43 = vpop.permute.xlu0 %1038 }
 0xfba   :  { %v2345_v44 = vadd.f32 %v1039_v43, %v1031_v40  ;;  %v1987_v43 = vld [vmem:[%s2461_s4] sm:$0xff]  }
 0xfbc   :  { %1943 = vtanh.f32 %v2345_v44 }
 0xfbe   :  { %v960_v50 = vpop.permute.xlu1 %959 }
 0xfbf   :  { %v2349_v51 = vadd.f32 %v960_v50, %v952_v45  ;;  %v1988_v45 = vld [vmem:[%s2461_s4 + $0x8] sm:$0xff]   ;;  %v1989_v50 = vld [vmem:[%s2460_s3] ss:$0 sm:$0xff] }
 0xfc1   :  { %1945 = vtanh.f32 %v2349_v51 }
 0xfc6   :  { %v1944_v52 = vpop.eup %1943 }
 0xfc7   :  { %1044 = vrot.lane.b32.xlu0 %v1944_v52, %s1994_s19 }
 0xfcb   :  { %v1946_v15 = vpop.eup %1945 }
 0xfcc   :  { %965 = vrot.lane.b32.xlu1 %v1946_v15, %s1994_s19 }
0x1039   :  { %v1045_v53 = vpop.permute.xlu0 %1044 }
0x103a   :  { %v1047_v54 = vmul.f32 %v1940_v33, %v1045_v53 }
0x103c   :  { %v1048_v55 = vpack.c.bf16 %v1047_v54, %v1047_v54 }
0x103e   :  { %1052 = vrot.lane.b32.xlu0 %v1048_v55, %s1995_s20  ;;  %v966_v56 = vpop.permute.xlu1 %965 }
0x103f   :  { %v968_v57 = vmul.f32 %v1942_v38, %v966_v56 }
0x1041   :  { %v1588_v58 = vpack.c.bf16 %v968_v57, %v968_v57 }
0x1043   :  { %973 = vrot.lane.b32.xlu1 %v1588_v58, %s1994_s19 }
0x1047   :  { %1133 = vrot.lane.b32.xlu1 %v1048_v55, %s1995_s20 }
0x10b0   :  { %v1053_v12 = vpop.permute.xlu0 %1052 }
0x10b5   :  { %v974_v60 = vpop.permute.xlu1 %973 }
0x10b6   :  { %976 = vst.msk [vmem:[#allocation2] sm:$0xf] %vm355_vm6, %v974_v60 }
0x10b7   :  { %1055 = vst.msk [vmem:[#allocation2] sm:$0xf] %vm253_vm3, %v1053_v12 }
0x10b9   :  { %v1134_v61 = vpop.permute.xlu1 %1133 }
0x10ba   :  { %1802 = vmatmul.mubr.msk.bf16.vlgmr.msra.gmra.mrb[28].mxu0 %vm177_vm4, %v1134_v61 }
0x10bb   :  { %1806 = vmatpush3.bf16.msra.mxu0 %v2111_v35  ;;  %1813 = vmatprep.mubr.msk.bf16.mxu0 %vm1992_vm1, %v1991_v0 }
0x10bc   :  { %1807 = vmatprep.subr.bf16.mxu0 %v1991_v0 }
0x10be   :  { %v1056_v62 = vld [vmem:[#allocation2] sm:$0xf] }
0x10bf   :  { %1794 = vmatmul.mubr.msk.bf16.vlgmr.msra.gmra.mrb[24].mxu1 %vm280_vm5, %v1056_v62  ;;  %1808 = vmatpush3.bf16.msra.mxu0 %v2116_v37 }
0x10c0   :  { %1818 = vmatpush3.bf16.msra.mxu1 %v2050_v2  ;;  %1809 = vmatprep.subr.bf16.mxu0 %v1991_v0  ;;  %v148_v2 = vadd.f32 %v2146_v46, %v2085_v11 }
0x10c1   :  { %1819 = vmatprep.subr.bf16.mxu1 %v1991_v0  ;;  %1821 = vmatprep.mubr.msk.bf16.mxu1 %vm1992_vm1, %v1991_v0 }
0x10c3   :  { %1810 = vmatpush3.bf16.msra.mxu0 %v2133_v41 }
0x10c4   :  { %1820 = vmatpush3.bf16.msra.mxu1 %v2069_v10  ;;  %1811 = vmatprep.subr.bf16.mxu0 %v1991_v0 }
0x10c5   :  { %1825 = vmatprep.subr.bf16.mxu1 %v1991_v0 }
0x10c7   :  { %1812 = vmatpush3.bf16.msra.mxu0 %v2140_v42 }
0x10c8   :  { %1837 = vmatprep.subr.bf16.mxu0 %v1991_v0 }
0x118d   :  { %v1172_v35 = vpop.f32.mrb[28].mxu0 }
0x118e   :  { %v1178_v37 = vadd.f32 %v1172_v35, %v148_v2  ;;  %v1803_v63 = vpop.f32.mrb[29].mxu0 }
0x118f   :  { %v1175_v1 = vpop.f32.mrb[30].mxu0 }
0x1190   :  { %1947 = vtanh.f32 %v1178_v37  ;;  %v1804_v3 = vpop.f32.mrb[31].mxu0  ;;  %v1564_v11 = vmul.f32 -1.442695, %v1178_v37 }
0x1192   :  { %v1094_v4 = vpop.f32.mrb[24].mxu1 }
0x1193   :  { %v1095_v10 = vadd.f32 %v2178_v59, %v1094_v4  ;;  %v1795_v5 = vpop.f32.mrb[25].mxu1 }
0x1194   :  { %v1097_v6 = vpop.f32.mrb[26].mxu1 }
0x1195   :  { %1949 = vtanh.f32 %v1095_v10  ;;  %v1796_v7 = vpop.f32.mrb[27].mxu1  ;;  %v1561_v46 = vmul.f32 -1.442695, %v1095_v10 }
0x1196   :  { %1951 = vpow2.f32 %v1564_v11 }
0x1197   :  { %1953 = vpow2.f32 %v1561_v46 }
0x119a   :  { %v1948_v8 = vpop.eup %1947 }
0x119b   :  { %1188 = vrot.lane.b32.xlu1 %v1948_v8, %s1994_s19 }
0x119f   :  { %v1950_v9 = vpop.eup %1949 }
0x11a0   :  { %1109 = vrot.lane.b32.xlu0 %v1950_v9, %s1994_s19  ;;  %v1952_v13 = vpop.eup %1951 }
0x11a1   :  { %v1182_v14 = vadd.f32 1.0, %v1952_v13  ;;  %v1954_v16 = vpop.eup %1953 }
0x11a2   :  { %v1103_v17 = vadd.f32 1.0, %v1954_v16 }
0x11a3   :  { %1955 = vrcp.f32 %v1182_v14 }
0x11a4   :  { %1957 = vrcp.f32 %v1103_v17 }
0x11ad   :  { %v1956_v18 = vpop.eup %1955 }
0x11ae   :  { %v1958_v21 = vpop.eup %1957  ;;  %v1186_v24 = vmul.f32 %v1956_v18, %v2345_v44 }
0x11af   :  { %v1107_v28 = vmul.f32 %v1958_v21, %v2349_v51  ;;  %v151_v51 = vadd.f32 %v1989_v50, %v2150_v48 }
0x120d   :  { %v1189_v20 = vpop.permute.xlu1 %1188 }
0x120e   :  { %v1191_v19 = vmul.f32 %v1956_v18, %v1189_v20 }
0x1210   :  { %1193 = vrot.lane.b32.xlu1 %v1191_v19, %s1995_s20 }
0x1212   :  { %v1110_v22 = vpop.permute.xlu0 %1109 }
0x1213   :  { %v1112_v23 = vmul.f32 %v1958_v21, %v1110_v22 }
0x1215   :  { %1114 = vrot.lane.b32.xlu0 %v1112_v23, %s1995_s20 }
0x1282   :  { %v1194_v25 = vpop.permute.xlu1 %1193 }
0x1283   :  { %v2385_v27 = vadd.f32 %v1194_v25, %v1186_v24  ;;  %v1990_v25 = vld [vmem:[%s2462_s5] ss:$0 sm:$0xff] }
0x1285   :  { %1959 = vtanh.f32 %v2385_v27 }
0x1287   :  { %v1115_v49 = vpop.permute.xlu0 %1114 }
0x1288   :  { %v2389_v26 = vadd.f32 %v1115_v49, %v1107_v28 }
0x128a   :  { %1961 = vtanh.f32 %v2389_v26 }
0x128f   :  { %v1960_v29 = vpop.eup %1959 }
0x1290   :  { %1199 = vrot.lane.b32.xlu1 %v1960_v29, %s1994_s19 }
0x1294   :  { %v1962_v30 = vpop.eup %1961 }
0x1295   :  { %1120 = vrot.lane.b32.xlu0 %v1962_v30, %s1994_s19 }
0x1302   :  { %v1200_v31 = vpop.permute.xlu1 %1199 }
0x1303   :  { %v1202_v32 = vmul.f32 %v1956_v18, %v1200_v31 }
0x1305   :  { %v1203_v33 = vpack.c.bf16 %v1202_v32, %v1202_v32 }
0x1307   :  { %v1121_v34 = vpop.permute.xlu0 %1120  ;;  %1207 = vrot.lane.b32.xlu1 %v1203_v33, %s1995_s20 }
0x1308   :  { %v1123_v36 = vmul.f32 %v1958_v21, %v1121_v34 }
0x130a   :  { %v1590_v38 = vpack.c.bf16 %v1123_v36, %v1123_v36 }
0x130c   :  { %1128 = vrot.lane.b32.xlu0 %v1590_v38, %s1994_s19 }
0x1310   :  { %1288 = vrot.lane.b32.xlu0 %v1203_v33, %s1995_s20 }
0x1379   :  { %v1208_v39 = vpop.permute.xlu1 %1207 }
0x137e   :  { %v1129_v47 = vpop.permute.xlu0 %1128 }
0x137f   :  { %1131 = vst.msk [vmem:[#allocation2] sm:$0xf] %vm355_vm6, %v1129_v47 }
0x1380   :  { %1210 = vst.msk [vmem:[#allocation2] sm:$0xf] %vm253_vm3, %v1208_v39 }
0x1382   :  { %v1289_v40 = vpop.permute.xlu0 %1288 }
0x1383   :  { %1822 = vmatmul.mubr.msk.bf16.vlgmr.msra.gmra.mrb[28].mxu1 %vm177_vm4, %v1289_v40  ;;  %v1857_v40 = vld [vmem:[%s2463_s6] sm:$0xff]  }
0x1384   :  { %1826 = vmatpush3.bf16.msra.mxu1 %v1987_v43  ;;  %1833 = vmatprep.mubr.msk.bf16.mxu1 %vm1992_vm1, %v1991_v0  ;;  %v1858_v43 = vld [vmem:[%s2463_s6 + $0x8] sm:$0xff]  }
0x1385   :  { %1827 = vmatprep.subr.bf16.mxu1 %v1991_v0 }
0x1387   :  { %v1211_v44 = vld [vmem:[#allocation2] sm:$0xf] }
0x1388   :  { %1814 = vmatmul.mubr.msk.bf16.vlgmr.msra.gmra.mrb[32].mxu0 %vm280_vm5, %v1211_v44  ;;  %1828 = vmatpush3.bf16.msra.mxu1 %v1988_v45 }
0x1389   :  { %1829 = vmatprep.subr.bf16.mxu1 %v1991_v0  ;;  %1841 = vmatprep.mubr.msk.bf16.mxu0 %vm1992_vm1, %v1991_v0 }
0x138a   :  { %1838 = vmatpush3.bf16.msra.mxu0 %v1857_v40 }
0x138b   :  { %1839 = vmatprep.subr.bf16.mxu0 %v1991_v0 }
0x138c   :  { %1830 = vmatpush3.bf16.msra.mxu1 %v2133_v41 }
0x138d   :  { %1831 = vmatprep.subr.bf16.mxu1 %v1991_v0  ;;  %v1575_v0 = vld [vmem:[%s2464_s7] ss:$0 sm:$0xff] }
0x138e   :  { %1840 = vmatpush3.bf16.msra.mxu0 %v1858_v43 }
0x1390   :  { %1832 = vmatpush3.bf16.msra.mxu1 %v2140_v42 }
0x1456   :  { %v1327_v52 = vpop.f32.mrb[28].mxu1 }
0x1457   :  { %v1333_v15 = vadd.f32 %v1327_v52, %v151_v51  ;;  %v1823_v53 = vpop.f32.mrb[29].mxu1 }
0x1458   :  { %v1330_v54 = vpop.f32.mrb[30].mxu1 }
0x1459   :  { %1963 = vtanh.f32 %v1333_v15  ;;  %v1824_v55 = vpop.f32.mrb[31].mxu1  ;;  %v1570_v48 = vmul.f32 -1.442695, %v1333_v15 }
0x145b   :  { %v1249_v56 = vpop.f32.mrb[32].mxu0 }
0x145c   :  { %v1250_v57 = vadd.f32 %v2178_v59, %v1249_v56  ;;  %v1815_v41 = vpop.f32.mrb[33].mxu0 }
0x145d   :  { %v1252_v58 = vpop.f32.mrb[34].mxu0 }
0x145e   :  { %1965 = vtanh.f32 %v1250_v57  ;;  %v1816_v60 = vpop.f32.mrb[35].mxu0  ;;  %v1567_v61 = vmul.f32 -1.442695, %v1250_v57 }
0x145f   :  { %1967 = vpow2.f32 %v1570_v48 }
0x1460   :  { %1969 = vpow2.f32 %v1567_v61 }
0x1463   :  { %v1964_v42 = vpop.eup %1963 }
0x1464   :  { %1343 = vrot.lane.b32.xlu0 %v1964_v42, %s1994_s19 }
0x1468   :  { %v1966_v12 = vpop.eup %1965 }
0x1469   :  { %1264 = vrot.lane.b32.xlu1 %v1966_v12, %s1994_s19  ;;  %v1968_v62 = vpop.eup %1967 }
0x146a   :  { %v1337_v2 = vadd.f32 1.0, %v1968_v62  ;;  %v1970_v35 = vpop.eup %1969 }
0x146b   :  { %v1258_v37 = vadd.f32 1.0, %v1970_v35 }
0x146c   :  { %1971 = vrcp.f32 %v1337_v2 }
0x146d   :  { %1973 = vrcp.f32 %v1258_v37 }
0x1476   :  { %v1972_v59 = vpop.eup %1971 }
0x1477   :  { %v1974_v3 = vpop.eup %1973  ;;  %v1341_v5 = vmul.f32 %v1972_v59, %v2385_v27 }
0x1478   :  { %v1262_v8 = vmul.f32 %v1974_v3, %v2389_v26 }
0x14d6   :  { %v1344_v63 = vpop.permute.xlu0 %1343 }
0x14d7   :  { %v1346_v1 = vmul.f32 %v1972_v59, %v1344_v63 }
0x14d9   :  { %1348 = vrot.lane.b32.xlu0 %v1346_v1, %s1995_s20 }
0x14db   :  { %v1265_v4 = vpop.permute.xlu1 %1264 }
0x14dc   :  { %v1267_v10 = vmul.f32 %v1974_v3, %v1265_v4 }
0x14de   :  { %1269 = vrot.lane.b32.xlu1 %v1267_v10, %s1995_s20 }
0x154b   :  { %v1349_v6 = vpop.permute.xlu0 %1348 }
0x154c   :  { %v1351_v7 = vadd.f32 %v1349_v6, %v1341_v5 }
0x154e   :  { %1975 = vtanh.f32 %v1351_v7 }
0x1550   :  { %v1270_v9 = vpop.permute.xlu1 %1269 }
0x1551   :  { %v1272_v11 = vadd.f32 %v1270_v9, %v1262_v8 }
0x1553   :  { %1977 = vtanh.f32 %v1272_v11 }
0x1558   :  { %v1976_v46 = vpop.eup %1975 }
0x1559   :  { %1354 = vrot.lane.b32.xlu0 %v1976_v46, %s1994_s19 }
0x155d   :  { %v1978_v13 = vpop.eup %1977 }
0x155e   :  { %1275 = vrot.lane.b32.xlu1 %v1978_v13, %s1994_s19 }
0x15cb   :  { %v1355_v14 = vpop.permute.xlu0 %1354 }
0x15cc   :  { %v1357_v16 = vmul.f32 %v1972_v59, %v1355_v14 }
0x15ce   :  { %v1593_v17 = vpack.c.bf16 %v1357_v16, %v1357_v16 }
0x15d0   :  { %1362 = vrot.lane.b32.xlu0 %v1593_v17, %s1995_s20  ;;  %v1276_v18 = vpop.permute.xlu1 %1275 }
0x15d1   :  { %v1278_v20 = vmul.f32 %v1974_v3, %v1276_v18 }
0x15d3   :  { %v1592_v19 = vpack.c.bf16 %v1278_v20, %v1278_v20 }
0x15d5   :  { %1283 = vrot.lane.b32.xlu1 %v1592_v19, %s1994_s19 }
0x1642   :  { %v1363_v22 = vpop.permute.xlu0 %1362 }
0x1647   :  { %v1284_v21 = vpop.permute.xlu1 %1283 }
0x1648   :  { %1286 = vst.msk [vmem:[#allocation2] sm:$0xf] %vm355_vm6, %v1284_v21 }
0x1649   :  { %1365 = vst.msk [vmem:[#allocation2] sm:$0xf] %vm253_vm3, %v1363_v22 }
0x1650   :  { %v1366_v23 = vld [vmem:[#allocation2] sm:$0xf] }
0x1651   :  { %1834 = vmatmul.mubr.msk.bf16.vlgmr.msra.gmra.mrb[32].mxu1 %vm280_vm5, %v1366_v23 }
0x1724   :  { %v1404_v24 = vpop.f32.mrb[32].mxu1 }
0x1725   :  { %v1405_v27 = vadd.f32 %v1990_v25, %v1404_v24  ;;  %v1835_v28 = vpop.f32.mrb[33].mxu1 }
0x1726   :  { %v1407_v49 = vpop.f32.mrb[34].mxu1 }
0x1727   :  { %1979 = vtanh.f32 %v1405_v27  ;;  %v1836_v26 = vpop.f32.mrb[35].mxu1  ;;  %v1573_v30 = vmul.f32 -1.442695, %v1405_v27 }
0x1729   :  { %1981 = vpow2.f32 %v1573_v30 }
0x1731   :  { %v1980_v29 = vpop.eup %1979 }
0x1732   :  { %1419 = vrot.lane.b32.xlu1 %v1980_v29, %s1994_s19 }
0x1733   :  { %v1982_v31 = vpop.eup %1981 }
0x1734   :  { %v1413_v32 = vadd.f32 1.0, %v1982_v31 }
0x1736   :  { %1983 = vrcp.f32 %v1413_v32 }
0x1740   :  { %v1984_v33 = vpop.eup %1983 }
0x1741   :  { %v1417_v38 = vmul.f32 %v1984_v33, %v1272_v11 }
0x17a4   :  { %v1420_v34 = vpop.permute.xlu1 %1419 }
0x17a5   :  { %v1422_v36 = vmul.f32 %v1984_v33, %v1420_v34 }
0x17a7   :  { %1424 = vrot.lane.b32.xlu0 %v1422_v36, %s1995_s20 }
0x1819   :  { %v1425_v47 = vpop.permute.xlu0 %1424 }
0x181a   :  { %v1427_v39 = vadd.f32 %v1425_v47, %v1417_v38 }
0x181c   :  { %1985 = vtanh.f32 %v1427_v39 }
0x1826   :  { %v1986_v44 = vpop.eup %1985 }
0x1827   :  { %1430 = vrot.lane.b32.xlu1 %v1986_v44, %s1994_s19 }
0x1899   :  { %v1431_v45 = vpop.permute.xlu1 %1430 }
0x189a   :  { %v1433_v50 = vmul.f32 %v1984_v33, %v1431_v45 }
0x189c   :  { %v1434_v51 = vpack.c.bf16 %v1433_v50, %v1433_v50 }
0x189e   :  { %1438 = vrot.lane.b32.xlu1 %v1434_v51, %s1994_s19  ;;  %1453 = vrot.lane.b32.xlu0 %v1434_v51, %s1995_s20 }
0x1910   :  { %v1439_v52 = vpop.permute.xlu1 %1438  ;;  %v1454_v15 = vpop.permute.xlu0 %1453 }
0x1911   :  { %1441 = vst.msk [vmem:[#allocation2] sm:$0xf] %vm355_vm6, %v1439_v52  ;;  %1842 = vmatmul.mubr.msk.bf16.vlgmr.msra.gmra.mrb[36].mxu0 %vm177_vm4, %v1454_v15 }
0x19e4   :  { %v1504_v53 = vpop.f32.mrb[36].mxu0 }
0x19e5   :  { %v1505_v54 = vadd.f32 %v1575_v0, %v1504_v53  ;;  %v1843_v55 = vpop.f32.mrb[37].mxu0 }
0x19e6   :  { %v1507_v56 = vpop.f32.mrb[38].mxu0 }
0x19e7   :  { %1510 = vst [vmem:[%s2465_s8] sm:$0xff] %v1505_v54  ;;  %v1844_v57 = vpop.f32.mrb[39].mxu0 }

</bundles_post_ra>
